<compile_context>
chip_gen: v6e
topology: v6e:2x2x1
jax: 0.10.0
libtpu: 0.0.40
codegen_flags: <defaults>
</compile_context>

<pallas_src>
import math

import jax
import jax.numpy as jnp
from jax import lax
from jax.experimental import pallas as pl
from jax.experimental.pallas import tpu as pltpu

# ------------------------ small synthetic GPT-2 config ------------------------
VOCAB = 256        # vocabulary size (real GPT-2: 50257) - multiple of 128
T = 8              # fix_len / sequence length
D = 128            # hidden size (real GPT-2: 768)       - multiple of 128
NHEAD = 4          # attention heads
HEAD_DIM = D // NHEAD
NLAYER = 2         # transformer blocks (real GPT-2: 12)
MAXPOS = 32        # position embeddings
EPS = 1e-5
NEG_INF = -1e9
TILE_V = 128       # LM-head vocab tile (lane-dense)


# ------------------------------ kernel helpers --------------------------------
def _layernorm(x, g, b):
    mu = jnp.mean(x, axis=-1, keepdims=True)
    var = jnp.mean((x - mu) ** 2, axis=-1, keepdims=True)
    return (x - mu) * lax.rsqrt(var + EPS) * g + b


def _gelu_new(x):
    # GPT-2 "gelu_new" (tanh approximation)
    return 0.5 * x * (1.0 + jnp.tanh(
        math.sqrt(2.0 / math.pi) * (x + 0.044715 * x * x * x)))


# -------------------- kernel 1: transformer layers (streamed) ------------------
def gpt2_layers_kernel(x_ref, mask_ref,
                       ln1g_ref, ln1b_ref, wqkv_ref, bqkv_ref, wpr_ref, bpr_ref,
                       ln2g_ref, ln2b_ref, wfc_ref, bfc_ref, wpr2_ref, bpr2_ref,
                       lnfg_ref, lnfb_ref,
                       h_ref):
    l = pl.program_id(0)
    n_layers = pl.num_programs(0)

    # residual stream lives in the (VMEM-resident) output block
    @pl.when(l == 0)
    def _():
        h_ref[...] = x_ref[...]

    x = h_ref[...]                                     # (B*T, D) f32
    mask = mask_ref[...]                               # (B, T)   f32
    Bsz, Tq = mask.shape
    Dm = x.shape[1]
    scale = 1.0 / math.sqrt(HEAD_DIM)

    # causal + key-padding additive bias (B, T, T), built in-kernel (tiny)
    rows = lax.broadcasted_iota(jnp.int32, (Tq, Tq), 0)
    cols = lax.broadcasted_iota(jnp.int32, (Tq, Tq), 1)
    causal_bias = jnp.where(cols <= rows, 0.0, NEG_INF).astype(jnp.float32)  # (T, T)
    key_bias = jnp.where(mask > 0.0, 0.0, NEG_INF).astype(jnp.float32)       # (B, T)
    bias = causal_bias[None, :, :] + key_bias[:, None, :]                    # (B, T, T)

    # ----------------------------- self attention -----------------------------
    h1 = _layernorm(x, ln1g_ref[...], ln1b_ref[...])
    qkv = jnp.dot(h1.astype(jnp.bfloat16), wqkv_ref[...],
                  preferred_element_type=jnp.float32) + bqkv_ref[...]        # (B*T, 3D)

    ctx_heads = []
    for hh in range(NHEAD):                            # static head loop, no zero-pad
        q = qkv[:, hh * HEAD_DIM:(hh + 1) * HEAD_DIM]
        k = qkv[:, Dm + hh * HEAD_DIM:Dm + (hh + 1) * HEAD_DIM]
        v = qkv[:, 2 * Dm + hh * HEAD_DIM:2 * Dm + (hh + 1) * HEAD_DIM]
        q = q.reshape(Bsz, Tq, HEAD_DIM).astype(jnp.bfloat16)
        k = k.reshape(Bsz, Tq, HEAD_DIM).astype(jnp.bfloat16)
        v = v.reshape(Bsz, Tq, HEAD_DIM).astype(jnp.bfloat16)

        # batch-fused scores / context (batch dim of dot_general = B)
        s = jnp.einsum('bqd,bkd->bqk', q, k,
                       preferred_element_type=jnp.float32) * scale + bias    # (B, T, T)
        s = s - jnp.max(s, axis=-1, keepdims=True)
        p = jnp.exp(s)
        p = p * pl.reciprocal(jnp.sum(p, axis=-1, keepdims=True), approx=True)
        ctx = jnp.einsum('bqk,bkd->bqd', p.astype(jnp.bfloat16), v,
                         preferred_element_type=jnp.float32)                 # (B, T, hd)
        ctx_heads.append(ctx.reshape(Bsz * Tq, HEAD_DIM))

    attn = jnp.concatenate(ctx_heads, axis=-1)                               # (B*T, D)
    attn = jnp.dot(attn.astype(jnp.bfloat16), wpr_ref[...],
                   preferred_element_type=jnp.float32) + bpr_ref[...]
    x = x + attn

    # ---------------------------------- MLP -----------------------------------
    h2 = _layernorm(x, ln2g_ref[...], ln2b_ref[...])
    ff = jnp.dot(h2.astype(jnp.bfloat16), wfc_ref[...],
                 preferred_element_type=jnp.float32) + bfc_ref[...]
    ff = _gelu_new(ff)
    ff = jnp.dot(ff.astype(jnp.bfloat16), wpr2_ref[...],
                 preferred_element_type=jnp.float32) + bpr2_ref[...]
    x = x + ff

    h_ref[...] = x

    # at the last layer, overwrite with the final LayerNorm (LM-head input)
    @pl.when(l == n_layers - 1)
    def _():
        h_ref[...] = _layernorm(x, lnfg_ref[...], lnfb_ref[...])


# ----------------------- kernel 2: tied LM head (vocab-tiled) ------------------
def lm_head_kernel(h_ref, w_ref, out_ref):
    # logits tile = ln_f(h) @ wte^T[:, tile] ; wte^T pre-stored as (D, V) bf16
    out_ref[...] = jnp.dot(h_ref[...].astype(jnp.bfloat16), w_ref[...],
                           preferred_element_type=jnp.float32)


# ---------------------------------- wrapper ------------------------------------
def _bcast_spec(shape):
    n = len(shape)
    return pl.BlockSpec(tuple(shape), lambda i, _n=n: (0,) * _n)


def _layer_spec(trailing):
    n = len(trailing)
    return pl.BlockSpec((None,) + tuple(trailing),
                        lambda l, _n=n: (l,) + (0,) * _n)


def gpt2_forward(input_seq, attn_mask, params):
    """input_seq: [B, T] int32 token ids; attn_mask: [B, T] {0,1}. Returns [B, T, V] f32."""
    B, Tq = input_seq.shape
    # embeddings (glue: integer gathers stay in plain JAX)
    x = params["wte"][input_seq] + params["wpe"][jnp.arange(Tq)][None, :, :]
    x = x.reshape(B * Tq, D).astype(jnp.float32)
    mask = attn_mask.astype(jnp.float32)

    layer_operands = (
        x, mask,
        params["ln1g"], params["ln1b"], params["wqkv"], params["bqkv"],
        params["wpr"], params["bpr"],
        params["ln2g"], params["ln2b"], params["wfc"], params["bfc"],
        params["wpr2"], params["bpr2"],
        params["lnf_g"], params["lnf_b"],
    )

    layer_in_specs = [
        _bcast_spec((B * Tq, D)),        # x (DMA'd once: block index constant)
        _bcast_spec((B, Tq)),            # mask
        _layer_spec((1, D)),             # ln1g
        _layer_spec((1, D)),             # ln1b
        _layer_spec((D, 3 * D)),         # wqkv   (streamed / double-buffered)
        _layer_spec((1, 3 * D)),         # bqkv
        _layer_spec((D, D)),             # wpr
        _layer_spec((1, D)),             # bpr
        _layer_spec((1, D)),             # ln2g
        _layer_spec((1, D)),             # ln2b
        _layer_spec((D, 4 * D)),         # wfc
        _layer_spec((1, 4 * D)),         # bfc
        _layer_spec((4 * D, D)),         # wpr2
        _layer_spec((1, D)),             # bpr2
        _bcast_spec((1, D)),             # lnf_g
        _bcast_spec((1, D)),             # lnf_b
    ]

    h_norm = pl.pallas_call(
        gpt2_layers_kernel,
        out_shape=jax.ShapeDtypeStruct((B * Tq, D), jnp.float32),
        grid=(NLAYER,),
        in_specs=layer_in_specs,
        out_specs=_bcast_spec((B * Tq, D)),   # resident accumulator across layers
        compiler_params=pltpu.CompilerParams(
            dimension_semantics=("arbitrary",),     # layer axis is sequential
            vmem_limit_bytes=32 * 1024 * 1024),     # explicit budget (raises v5e default)
    )(*layer_operands)

    logits = pl.pallas_call(
        lm_head_kernel,
        out_shape=jax.ShapeDtypeStruct((B * Tq, VOCAB), jnp.float32),
        grid=(VOCAB // TILE_V,),
        in_specs=[pl.BlockSpec((B * Tq, D), lambda j: (0, 0)),
                  pl.BlockSpec((D, TILE_V), lambda j: (0, j))],
        out_specs=pl.BlockSpec((B * Tq, TILE_V), lambda j: (0, j)),
        compiler_params=pltpu.CompilerParams(
            dimension_semantics=("parallel",),      # vocab tiles: megacore on v7x
            vmem_limit_bytes=32 * 1024 * 1024),
    )(h_norm, params["wte_t"])

    return logits.reshape(B, Tq, VOCAB)


# ------------------------------- parameter init --------------------------------
def init_params(key):
    def nrm(k, shape, scale=0.02):
        return (scale * jax.random.normal(k, shape)).astype(jnp.float32)

    keys = jax.random.split(key, 6)
    wte = nrm(keys[0], (VOCAB, D))
    return {
        "wte": wte,                                         # f32 table for embedding gather
        "wte_t": wte.T.astype(jnp.bfloat16),                # tied LM head, pre-transposed (D, V) bf16, stored once
        "wpe": nrm(keys[1], (MAXPOS, D)),
        "lnf_g": jnp.ones((1, D), jnp.float32),
        "lnf_b": jnp.zeros((1, D), jnp.float32),
        # per-layer params stacked on a leading layer axis; matmul weights bf16
        "ln1g": jnp.ones((NLAYER, 1, D), jnp.float32),
        "ln1b": jnp.zeros((NLAYER, 1, D), jnp.float32),
        "wqkv": nrm(keys[2], (NLAYER, D, 3 * D)).astype(jnp.bfloat16),   # c_attn W (HF Conv1D [in,out])
        "bqkv": jnp.zeros((NLAYER, 1, 3 * D), jnp.float32),              # c_attn b
        "wpr": nrm(keys[3], (NLAYER, D, D)).astype(jnp.bfloat16),        # attn c_proj W
        "bpr": jnp.zeros((NLAYER, 1, D), jnp.float32),                   # attn c_proj b
        "ln2g": jnp.ones((NLAYER, 1, D), jnp.float32),
        "ln2b": jnp.zeros((NLAYER, 1, D), jnp.float32),
        "wfc": nrm(keys[4], (NLAYER, D, 4 * D)).astype(jnp.bfloat16),    # mlp c_fc W
        "bfc": jnp.zeros((NLAYER, 1, 4 * D), jnp.float32),               # mlp c_fc b
        "wpr2": nrm(keys[5], (NLAYER, 4 * D, D)).astype(jnp.bfloat16),   # mlp c_proj W
        "bpr2": jnp.zeros((NLAYER, 1, D), jnp.float32),                  # mlp c_proj b
    }


# ----------------------------------- main ---------------------------------------
if __name__ == "__main__":
    key = jax.random.PRNGKey(0)
    k_param, k_tok = jax.random.split(key)
    params = init_params(k_param)

    B = 2
    input_seq = jax.random.randint(k_tok, (B, T), 0, VOCAB, dtype=jnp.int32)
    # pad the tail of the second sequence (attention_mask = 0 there)
    attn_mask = jnp.array([[1] * T, [1] * (T - 2) + [0, 0]], dtype=jnp.int32)

    logits = jax.jit(lambda s, m: gpt2_forward(s, m, params))(input_seq, attn_mask)
    jax.block_until_ready(logits)
    assert logits.shape == (B, T, VOCAB) and logits.dtype == jnp.float32
    print("KERNEL_OK")
</pallas_src>

<mosaic_0001>
module attributes {stable_mosaic.version = 11 : i64} {
  func.func @lm_head_kernel(%arg0: i32, %arg1: memref<16x128xf32, #tpu.memory_space<vmem>>, %arg2: memref<128x128xbf16, #tpu.memory_space<vmem>>, %arg3: memref<16x128xf32, #tpu.memory_space<vmem>>) attributes {dimension_semantics = [#tpu.dimension_semantics<parallel>], iteration_bounds = array<i64: 2>, scalar_prefetch = 0 : i64, scratch_operands = 0 : i64, tpu.core_type = #tpu.core_type<tc>, window_params = [{pipeline_mode = #tpu.pipeline_mode<synchronous>, transform_indices = @transform_0, window_bounds = array<i64: 16, 128>}, {transform_indices = @transform_1, window_bounds = array<i64: 128, 128>}, {transform_indices = @transform_2, window_bounds = array<i64: 16, 128>}]} {
    %c0 = arith.constant 0 : index
    %c0_0 = arith.constant 0 : index
    %0 = vector.load %arg1[%c0, %c0_0] : memref<16x128xf32, #tpu.memory_space<vmem>>, vector<16x128xf32>
    %1 = arith.truncf %0 : vector<16x128xf32> to vector<16x128xbf16>
    %c0_1 = arith.constant 0 : index
    %c0_2 = arith.constant 0 : index
    %2 = vector.load %arg2[%c0_1, %c0_2] : memref<128x128xbf16, #tpu.memory_space<vmem>>, vector<128x128xbf16>
    %cst = arith.constant dense<0.000000e+00> : vector<16x128xf32>
    %3 = tpu.matmul %1, %2, %cst {dimension_numbers = #tpu.dot_dimension_numbers<[1], [0], [0], [1], [0, 0, 1, 1], [], []>} : vector<16x128xbf16>, vector<128x128xbf16>, vector<16x128xf32> -> vector<16x128xf32>
    %c0_3 = arith.constant 0 : index
    %c0_4 = arith.constant 0 : index
    %4 = vector.load %arg3[%c0_3, %c0_4] : memref<16x128xf32, #tpu.memory_space<vmem>>, vector<16x128xf32>
    tpu.vector_store %arg3[%c0_3, %c0_4], %3 {strides = array<i32>} : memref<16x128xf32, #tpu.memory_space<vmem>>, vector<16x128xf32>,
    return
  }
  func.func @transform_0(%arg0: i32) -> (i32, i32) {
    %c0_i32 = arith.constant 0 : i32
    %c0_i32_0 = arith.constant 0 : i32
    %c0_i32_1 = arith.constant 0 : i32
    return %c0_i32, %c0_i32_0 : i32, i32
  }
  func.func @transform_1(%arg0: i32) -> (i32, i32) {
    %c0_i32 = arith.constant 0 : i32
    %c0_i32_0 = arith.constant 0 : i32
    return %c0_i32, %arg0 : i32, i32
  }
  func.func @transform_2(%arg0: i32) -> (i32, i32) {
    %c0_i32 = arith.constant 0 : i32
    %c0_i32_0 = arith.constant 0 : i32
    return %c0_i32, %arg0 : i32, i32
  }
}

module attributes {stable_mosaic.version = 11 : i64} {
  func.func @gpt2_layers_kernel(%arg0: i32, %arg1: memref<16x128xf32, #tpu.memory_space<vmem>>, %arg2: memref<2x8xf32, #tpu.memory_space<vmem>>, %arg3: memref<1x1x128xf32, #tpu.memory_space<vmem>>, %arg4: memref<1x1x128xf32, #tpu.memory_space<vmem>>, %arg5: memref<1x128x384xbf16, #tpu.memory_space<vmem>>, %arg6: memref<1x1x384xf32, #tpu.memory_space<vmem>>, %arg7: memref<1x128x128xbf16, #tpu.memory_space<vmem>>, %arg8: memref<1x1x128xf32, #tpu.memory_space<vmem>>, %arg9: memref<1x1x128xf32, #tpu.memory_space<vmem>>, %arg10: memref<1x1x128xf32, #tpu.memory_space<vmem>>, %arg11: memref<1x128x512xbf16, #tpu.memory_space<vmem>>, %arg12: memref<1x1x512xf32, #tpu.memory_space<vmem>>, %arg13: memref<1x512x128xbf16, #tpu.memory_space<vmem>>, %arg14: memref<1x1x128xf32, #tpu.memory_space<vmem>>, %arg15: memref<1x128xf32, #tpu.memory_space<vmem>>, %arg16: memref<1x128xf32, #tpu.memory_space<vmem>>, %arg17: memref<16x128xf32, #tpu.memory_space<vmem>>) attributes {dimension_semantics = [#tpu.dimension_semantics<arbitrary>], iteration_bounds = array<i64: 2>, scalar_prefetch = 0 : i64, scratch_operands = 0 : i64, tpu.core_type = #tpu.core_type<tc>, window_params = [{pipeline_mode = #tpu.pipeline_mode<synchronous>, transform_indices = @transform_0, window_bounds = array<i64: 16, 128>}, {pipeline_mode = #tpu.pipeline_mode<synchronous>, transform_indices = @transform_1, window_bounds = array<i64: 2, 8>}, {transform_indices = @transform_2, window_bounds = array<i64: 1, 1, 128>}, {transform_indices = @transform_3, window_bounds = array<i64: 1, 1, 128>}, {transform_indices = @transform_4, window_bounds = array<i64: 1, 128, 384>}, {transform_indices = @transform_5, window_bounds = array<i64: 1, 1, 384>}, {transform_indices = @transform_6, window_bounds = array<i64: 1, 128, 128>}, {transform_indices = @transform_7, window_bounds = array<i64: 1, 1, 128>}, {transform_indices = @transform_8, window_bounds = array<i64: 1, 1, 128>}, {transform_indices = @transform_9, window_bounds = array<i64: 1, 1, 128>}, {transform_indices = @transform_10, window_bounds = array<i64: 1, 128, 512>}, {transform_indices = @transform_11, window_bounds = array<i64: 1, 1, 512>}, {transform_indices = @transform_12, window_bounds = array<i64: 1, 512, 128>}, {transform_indices = @transform_13, window_bounds = array<i64: 1, 1, 128>}, {pipeline_mode = #tpu.pipeline_mode<synchronous>, transform_indices = @transform_14, window_bounds = array<i64: 1, 128>}, {pipeline_mode = #tpu.pipeline_mode<synchronous>, transform_indices = @transform_15, window_bounds = array<i64: 1, 128>}, {pipeline_mode = #tpu.pipeline_mode<synchronous>, transform_indices = @transform_16, window_bounds = array<i64: 16, 128>}]} {
    %c0_i32 = arith.constant 0 : i32
    %0 = arith.cmpi eq, %arg0, %c0_i32 : i32
    %1 = arith.extui %0 : i1 to i32
    %c0_i32_0 = arith.constant 0 : i32
    %2 = arith.cmpi ne, %1, %c0_i32_0 : i32
    scf.if %2 {
      %c0_85 = arith.constant 0 : index
      %c0_86 = arith.constant 0 : index
      %229 = vector.load %arg1[%c0_85, %c0_86] : memref<16x128xf32, #tpu.memory_space<vmem>>, vector<16x128xf32>
      %c0_87 = arith.constant 0 : index
      %c0_88 = arith.constant 0 : index
      %230 = vector.load %arg17[%c0_87, %c0_88] : memref<16x128xf32, #tpu.memory_space<vmem>>, vector<16x128xf32>
      tpu.vector_store %arg17[%c0_87, %c0_88], %229 {strides = array<i32>} : memref<16x128xf32, #tpu.memory_space<vmem>>, vector<16x128xf32>,
    } else {
    }
    %c0 = arith.constant 0 : index
    %c0_1 = arith.constant 0 : index
    %3 = vector.load %arg17[%c0, %c0_1] : memref<16x128xf32, #tpu.memory_space<vmem>>, vector<16x128xf32>
    %c0_2 = arith.constant 0 : index
    %c0_3 = arith.constant 0 : index
    %4 = vector.load %arg2[%c0_2, %c0_3] : memref<2x8xf32, #tpu.memory_space<vmem>>, vector<2x8xf32>
    %5 = tpu.iota {dimensions = array<i32: 0>} : vector<8x8xi32>
    %6 = tpu.iota {dimensions = array<i32: 1>} : vector<8x8xi32>
    %7 = arith.cmpi sle, %6, %5 : vector<8x8xi32>
    %cst = arith.constant 0.000000e+00 : f32
    %cst_4 = arith.constant -1.000000e+09 : f32
    %8 = vector.broadcast %cst : f32 to vector<8x8xf32>
    %9 = vector.broadcast %cst_4 : f32 to vector<8x8xf32>
    %10 = arith.select %7, %8, %9 : vector<8x8xi1>, vector<8x8xf32>
    %cst_5 = arith.constant 0.000000e+00 : f32
    %11 = vector.broadcast %cst_5 : f32 to vector<2x8xf32>
    %12 = arith.cmpf ogt, %4, %11 : vector<2x8xf32>
    %cst_6 = arith.constant 0.000000e+00 : f32
    %cst_7 = arith.constant -1.000000e+09 : f32
    %13 = vector.broadcast %cst_6 : f32 to vector<2x8xf32>
    %14 = vector.broadcast %cst_7 : f32 to vector<2x8xf32>
    %15 = arith.select %12, %13, %14 : vector<2x8xi1>, vector<2x8xf32>
    %16 = vector.shape_cast %10 : vector<8x8xf32> to vector<1x8x8xf32>
    %17 = vector.shape_cast %15 : vector<2x8xf32> to vector<2x1x8xf32>
    %18 = vector.broadcast %16 : vector<1x8x8xf32> to vector<2x8x8xf32>
    %19 = vector.broadcast %17 : vector<2x1x8xf32> to vector<2x8x8xf32>
    %20 = arith.addf %18, %19 : vector<2x8x8xf32>
    %c0_8 = arith.constant 0 : index
    %c0_9 = arith.constant 0 : index
    %c0_10 = arith.constant 0 : index
    %21 = vector.load %arg3[%c0_8, %c0_9, %c0_10] : memref<1x1x128xf32, #tpu.memory_space<vmem>>, vector<1x1x128xf32>
    %22 = vector.shape_cast %21 : vector<1x1x128xf32> to vector<1x128xf32>
    %c0_11 = arith.constant 0 : index
    %c0_12 = arith.constant 0 : index
    %c0_13 = arith.constant 0 : index
    %23 = vector.load %arg4[%c0_11, %c0_12, %c0_13] : memref<1x1x128xf32, #tpu.memory_space<vmem>>, vector<1x1x128xf32>
    %24 = vector.shape_cast %23 : vector<1x1x128xf32> to vector<1x128xf32>
    %cst_14 = arith.constant dense<0.000000e+00> : vector<16xf32>
    %25 = vector.multi_reduction <add>, %3, %cst_14 [1] : vector<16x128xf32> to vector<16xf32>
    %26 = vector.shape_cast %25 : vector<16xf32> to vector<16x1xf32>
    %cst_15 = arith.constant 1.280000e+02 : f32
    %27 = vector.broadcast %cst_15 : f32 to vector<16x1xf32>
    %28 = arith.divf %26, %27 : vector<16x1xf32>
    %29 = vector.broadcast %28 : vector<16x1xf32> to vector<16x128xf32>
    %30 = arith.subf %3, %29 : vector<16x128xf32>
    %31 = arith.mulf %30, %30 : vector<16x128xf32>
    %cst_16 = arith.constant dense<0.000000e+00> : vector<16xf32>
    %32 = vector.multi_reduction <add>, %31, %cst_16 [1] : vector<16x128xf32> to vector<16xf32>
    %33 = vector.shape_cast %32 : vector<16xf32> to vector<16x1xf32>
    %cst_17 = arith.constant 1.280000e+02 : f32
    %34 = vector.broadcast %cst_17 : f32 to vector<16x1xf32>
    %35 = arith.divf %33, %34 : vector<16x1xf32>
    %36 = vector.broadcast %28 : vector<16x1xf32> to vector<16x128xf32>
    %37 = arith.subf %3, %36 : vector<16x128xf32>
    %cst_18 = arith.constant 9.99999974E-6 : f32
    %38 = vector.broadcast %cst_18 : f32 to vector<16x1xf32>
    %39 = arith.addf %35, %38 : vector<16x1xf32>
    %40 = math.rsqrt %39 : vector<16x1xf32>
    %41 = vector.broadcast %40 : vector<16x1xf32> to vector<16x128xf32>
    %42 = arith.mulf %37, %41 : vector<16x128xf32>
    %43 = vector.broadcast %22 : vector<1x128xf32> to vector<16x128xf32>
    %44 = arith.mulf %42, %43 : vector<16x128xf32>
    %45 = vector.broadcast %24 : vector<1x128xf32> to vector<16x128xf32>
    %46 = arith.addf %44, %45 : vector<16x128xf32>
    %47 = arith.truncf %46 : vector<16x128xf32> to vector<16x128xbf16>
    %c0_19 = arith.constant 0 : index
    %c0_20 = arith.constant 0 : index
    %c0_21 = arith.constant 0 : index
    %48 = vector.load %arg5[%c0_19, %c0_20, %c0_21] : memref<1x128x384xbf16, #tpu.memory_space<vmem>>, vector<1x128x384xbf16>
    %49 = vector.shape_cast %48 : vector<1x128x384xbf16> to vector<128x384xbf16>
    %cst_22 = arith.constant dense<0.000000e+00> : vector<16x384xf32>
    %50 = tpu.matmul %47, %49, %cst_22 {dimension_numbers = #tpu.dot_dimension_numbers<[1], [0], [0], [1], [0, 0, 1, 1], [], []>} : vector<16x128xbf16>, vector<128x384xbf16>, vector<16x384xf32> -> vector<16x384xf32>
    %c0_23 = arith.constant 0 : index
    %c0_24 = arith.constant 0 : index
    %c0_25 = arith.constant 0 : index
    %51 = vector.load %arg6[%c0_23, %c0_24, %c0_25] : memref<1x1x384xf32, #tpu.memory_space<vmem>>, vector<1x1x384xf32>
    %52 = vector.shape_cast %51 : vector<1x1x384xf32> to vector<1x384xf32>
    %53 = vector.broadcast %52 : vector<1x384xf32> to vector<16x384xf32>
    %54 = arith.addf %50, %53 : vector<16x384xf32>
    %55 = vector.extract_strided_slice %54 {offsets = [0, 0], sizes = [16, 32], strides = [1, 1]} : vector<16x384xf32> to vector<16x32xf32>
    %56 = vector.extract_strided_slice %54 {offsets = [0, 128], sizes = [16, 32], strides = [1, 1]} : vector<16x384xf32> to vector<16x32xf32>
    %57 = vector.extract_strided_slice %54 {offsets = [0, 256], sizes = [16, 32], strides = [1, 1]} : vector<16x384xf32> to vector<16x32xf32>
    %58 = vector.shape_cast %55 : vector<16x32xf32> to vector<2x8x32xf32>
    %59 = arith.truncf %58 : vector<2x8x32xf32> to vector<2x8x32xbf16>
    %60 = vector.shape_cast %56 : vector<16x32xf32> to vector<2x8x32xf32>
    %61 = arith.truncf %60 : vector<2x8x32xf32> to vector<2x8x32xbf16>
    %62 = vector.shape_cast %57 : vector<16x32xf32> to vector<2x8x32xf32>
    %63 = arith.truncf %62 : vector<2x8x32xf32> to vector<2x8x32xbf16>
    "tpu.trace_start"() <{level = 10 : i32, message = "bqd,bkd->bqk"}> : () -> ()
    %cst_26 = arith.constant dense<0.000000e+00> : vector<2x8x8xf32>
    %64 = tpu.matmul %59, %61, %cst_26 {dimension_numbers = #tpu.dot_dimension_numbers<[2], [2], [1], [1], [0, 0, 0, 1, 1, 1], [0], [0]>} : vector<2x8x32xbf16>, vector<2x8x32xbf16>, vector<2x8x8xf32> -> vector<2x8x8xf32>
    "tpu.trace_stop"() : () -> ()
    %cst_27 = arith.constant 0.176776692 : f32
    %65 = vector.broadcast %cst_27 : f32 to vector<2x8x8xf32>
    %66 = arith.mulf %64, %65 : vector<2x8x8xf32>
    %67 = arith.addf %66, %20 : vector<2x8x8xf32>
    %cst_28 = arith.constant dense<0xFF800000> : vector<2x8xf32>
    %68 = vector.multi_reduction <maximumf>, %67, %cst_28 [2] : vector<2x8x8xf32> to vector<2x8xf32>
    %69 = vector.shape_cast %68 : vector<2x8xf32> to vector<2x8x1xf32>
    %70 = vector.broadcast %69 : vector<2x8x1xf32> to vector<2x8x8xf32>
    %71 = arith.subf %67, %70 : vector<2x8x8xf32>
    %72 = math.exp %71 : vector<2x8x8xf32>
    %cst_29 = arith.constant dense<0.000000e+00> : vector<2x8xf32>
    %73 = vector.multi_reduction <add>, %72, %cst_29 [2] : vector<2x8x8xf32> to vector<2x8xf32>
    %74 = vector.shape_cast %73 : vector<2x8xf32> to vector<2x8x1xf32>
    %75 = tpu.reciprocal %74 {approx = true} : vector<2x8x1xf32> -> vector<2x8x1xf32>
    %76 = vector.broadcast %75 : vector<2x8x1xf32> to vector<2x8x8xf32>
    %77 = arith.mulf %72, %76 : vector<2x8x8xf32>
    %78 = arith.truncf %77 : vector<2x8x8xf32> to vector<2x8x8xbf16>
    "tpu.trace_start"() <{level = 10 : i32, message = "bqk,bkd->bqd"}> : () -> ()
    %cst_30 = arith.constant dense<0.000000e+00> : vector<2x8x32xf32>
    %79 = tpu.matmul %78, %63, %cst_30 {dimension_numbers = #tpu.dot_dimension_numbers<[2], [1], [1], [2], [0, 0, 0, 1, 1, 2], [0], [0]>} : vector<2x8x8xbf16>, vector<2x8x32xbf16>, vector<2x8x32xf32> -> vector<2x8x32xf32>
    "tpu.trace_stop"() : () -> ()
    %80 = vector.shape_cast %79 : vector<2x8x32xf32> to vector<16x32xf32>
    %81 = vector.extract_strided_slice %54 {offsets = [0, 32], sizes = [16, 32], strides = [1, 1]} : vector<16x384xf32> to vector<16x32xf32>
    %82 = vector.extract_strided_slice %54 {offsets = [0, 160], sizes = [16, 32], strides = [1, 1]} : vector<16x384xf32> to vector<16x32xf32>
    %83 = vector.extract_strided_slice %54 {offsets = [0, 288], sizes = [16, 32], strides = [1, 1]} : vector<16x384xf32> to vector<16x32xf32>
    %84 = vector.shape_cast %81 : vector<16x32xf32> to vector<2x8x32xf32>
    %85 = arith.truncf %84 : vector<2x8x32xf32> to vector<2x8x32xbf16>
    %86 = vector.shape_cast %82 : vector<16x32xf32> to vector<2x8x32xf32>
    %87 = arith.truncf %86 : vector<2x8x32xf32> to vector<2x8x32xbf16>
    %88 = vector.shape_cast %83 : vector<16x32xf32> to vector<2x8x32xf32>
    %89 = arith.truncf %88 : vector<2x8x32xf32> to vector<2x8x32xbf16>
    "tpu.trace_start"() <{level = 10 : i32, message = "bqd,bkd->bqk"}> : () -> ()
    %cst_31 = arith.constant dense<0.000000e+00> : vector<2x8x8xf32>
    %90 = tpu.matmul %85, %87, %cst_31 {dimension_numbers = #tpu.dot_dimension_numbers<[2], [2], [1], [1], [0, 0, 0, 1, 1, 1], [0], [0]>} : vector<2x8x32xbf16>, vector<2x8x32xbf16>, vector<2x8x8xf32> -> vector<2x8x8xf32>
    "tpu.trace_stop"() : () -> ()
    %cst_32 = arith.constant 0.176776692 : f32
    %91 = vector.broadcast %cst_32 : f32 to vector<2x8x8xf32>
    %92 = arith.mulf %90, %91 : vector<2x8x8xf32>
    %93 = arith.addf %92, %20 : vector<2x8x8xf32>
    %cst_33 = arith.constant dense<0xFF800000> : vector<2x8xf32>
    %94 = vector.multi_reduction <maximumf>, %93, %cst_33 [2] : vector<2x8x8xf32> to vector<2x8xf32>
    %95 = vector.shape_cast %94 : vector<2x8xf32> to vector<2x8x1xf32>
    %96 = vector.broadcast %95 : vector<2x8x1xf32> to vector<2x8x8xf32>
    %97 = arith.subf %93, %96 : vector<2x8x8xf32>
    %98 = math.exp %97 : vector<2x8x8xf32>
    %cst_34 = arith.constant dense<0.000000e+00> : vector<2x8xf32>
    %99 = vector.multi_reduction <add>, %98, %cst_34 [2] : vector<2x8x8xf32> to vector<2x8xf32>
    %100 = vector.shape_cast %99 : vector<2x8xf32> to vector<2x8x1xf32>
    %101 = tpu.reciprocal %100 {approx = true} : vector<2x8x1xf32> -> vector<2x8x1xf32>
    %102 = vector.broadcast %101 : vector<2x8x1xf32> to vector<2x8x8xf32>
    %103 = arith.mulf %98, %102 : vector<2x8x8xf32>
    %104 = arith.truncf %103 : vector<2x8x8xf32> to vector<2x8x8xbf16>
    "tpu.trace_start"() <{level = 10 : i32, message = "bqk,bkd->bqd"}> : () -> ()
    %cst_35 = arith.constant dense<0.000000e+00> : vector<2x8x32xf32>
    %105 = tpu.matmul %104, %89, %cst_35 {dimension_numbers = #tpu.dot_dimension_numbers<[2], [1], [1], [2], [0, 0, 0, 1, 1, 2], [0], [0]>} : vector<2x8x8xbf16>, vector<2x8x32xbf16>, vector<2x8x32xf32> -> vector<2x8x32xf32>
    "tpu.trace_stop"() : () -> ()
    %106 = vector.shape_cast %105 : vector<2x8x32xf32> to vector<16x32xf32>
    %107 = vector.extract_strided_slice %54 {offsets = [0, 64], sizes = [16, 32], strides = [1, 1]} : vector<16x384xf32> to vector<16x32xf32>
    %108 = vector.extract_strided_slice %54 {offsets = [0, 192], sizes = [16, 32], strides = [1, 1]} : vector<16x384xf32> to vector<16x32xf32>
    %109 = vector.extract_strided_slice %54 {offsets = [0, 320], sizes = [16, 32], strides = [1, 1]} : vector<16x384xf32> to vector<16x32xf32>
    %110 = vector.shape_cast %107 : vector<16x32xf32> to vector<2x8x32xf32>
    %111 = arith.truncf %110 : vector<2x8x32xf32> to vector<2x8x32xbf16>
    %112 = vector.shape_cast %108 : vector<16x32xf32> to vector<2x8x32xf32>
    %113 = arith.truncf %112 : vector<2x8x32xf32> to vector<2x8x32xbf16>
    %114 = vector.shape_cast %109 : vector<16x32xf32> to vector<2x8x32xf32>
    %115 = arith.truncf %114 : vector<2x8x32xf32> to vector<2x8x32xbf16>
    "tpu.trace_start"() <{level = 10 : i32, message = "bqd,bkd->bqk"}> : () -> ()
    %cst_36 = arith.constant dense<0.000000e+00> : vector<2x8x8xf32>
    %116 = tpu.matmul %111, %113, %cst_36 {dimension_numbers = #tpu.dot_dimension_numbers<[2], [2], [1], [1], [0, 0, 0, 1, 1, 1], [0], [0]>} : vector<2x8x32xbf16>, vector<2x8x32xbf16>, vector<2x8x8xf32> -> vector<2x8x8xf32>
    "tpu.trace_stop"() : () -> ()
    %cst_37 = arith.constant 0.176776692 : f32
    %117 = vector.broadcast %cst_37 : f32 to vector<2x8x8xf32>
    %118 = arith.mulf %116, %117 : vector<2x8x8xf32>
    %119 = arith.addf %118, %20 : vector<2x8x8xf32>
    %cst_38 = arith.constant dense<0xFF800000> : vector<2x8xf32>
    %120 = vector.multi_reduction <maximumf>, %119, %cst_38 [2] : vector<2x8x8xf32> to vector<2x8xf32>
    %121 = vector.shape_cast %120 : vector<2x8xf32> to vector<2x8x1xf32>
    %122 = vector.broadcast %121 : vector<2x8x1xf32> to vector<2x8x8xf32>
    %123 = arith.subf %119, %122 : vector<2x8x8xf32>
    %124 = math.exp %123 : vector<2x8x8xf32>
    %cst_39 = arith.constant dense<0.000000e+00> : vector<2x8xf32>
    %125 = vector.multi_reduction <add>, %124, %cst_39 [2] : vector<2x8x8xf32> to vector<2x8xf32>
    %126 = vector.shape_cast %125 : vector<2x8xf32> to vector<2x8x1xf32>
    %127 = tpu.reciprocal %126 {approx = true} : vector<2x8x1xf32> -> vector<2x8x1xf32>
    %128 = vector.broadcast %127 : vector<2x8x1xf32> to vector<2x8x8xf32>
    %129 = arith.mulf %124, %128 : vector<2x8x8xf32>
    %130 = arith.truncf %129 : vector<2x8x8xf32> to vector<2x8x8xbf16>
    "tpu.trace_start"() <{level = 10 : i32, message = "bqk,bkd->bqd"}> : () -> ()
    %cst_40 = arith.constant dense<0.000000e+00> : vector<2x8x32xf32>
    %131 = tpu.matmul %130, %115, %cst_40 {dimension_numbers = #tpu.dot_dimension_numbers<[2], [1], [1], [2], [0, 0, 0, 1, 1, 2], [0], [0]>} : vector<2x8x8xbf16>, vector<2x8x32xbf16>, vector<2x8x32xf32> -> vector<2x8x32xf32>
    "tpu.trace_stop"() : () -> ()
    %132 = vector.shape_cast %131 : vector<2x8x32xf32> to vector<16x32xf32>
    %133 = vector.extract_strided_slice %54 {offsets = [0, 96], sizes = [16, 32], strides = [1, 1]} : vector<16x384xf32> to vector<16x32xf32>
    %134 = vector.extract_strided_slice %54 {offsets = [0, 224], sizes = [16, 32], strides = [1, 1]} : vector<16x384xf32> to vector<16x32xf32>
    %135 = vector.extract_strided_slice %54 {offsets = [0, 352], sizes = [16, 32], strides = [1, 1]} : vector<16x384xf32> to vector<16x32xf32>
    %136 = vector.shape_cast %133 : vector<16x32xf32> to vector<2x8x32xf32>
    %137 = arith.truncf %136 : vector<2x8x32xf32> to vector<2x8x32xbf16>
    %138 = vector.shape_cast %134 : vector<16x32xf32> to vector<2x8x32xf32>
    %139 = arith.truncf %138 : vector<2x8x32xf32> to vector<2x8x32xbf16>
    %140 = vector.shape_cast %135 : vector<16x32xf32> to vector<2x8x32xf32>
    %141 = arith.truncf %140 : vector<2x8x32xf32> to vector<2x8x32xbf16>
    "tpu.trace_start"() <{level = 10 : i32, message = "bqd,bkd->bqk"}> : () -> ()
    %cst_41 = arith.constant dense<0.000000e+00> : vector<2x8x8xf32>
    %142 = tpu.matmul %137, %139, %cst_41 {dimension_numbers = #tpu.dot_dimension_numbers<[2], [2], [1], [1], [0, 0, 0, 1, 1, 1], [0], [0]>} : vector<2x8x32xbf16>, vector<2x8x32xbf16>, vector<2x8x8xf32> -> vector<2x8x8xf32>
    "tpu.trace_stop"() : () -> ()
    %cst_42 = arith.constant 0.176776692 : f32
    %143 = vector.broadcast %cst_42 : f32 to vector<2x8x8xf32>
    %144 = arith.mulf %142, %143 : vector<2x8x8xf32>
    %145 = arith.addf %144, %20 : vector<2x8x8xf32>
    %cst_43 = arith.constant dense<0xFF800000> : vector<2x8xf32>
    %146 = vector.multi_reduction <maximumf>, %145, %cst_43 [2] : vector<2x8x8xf32> to vector<2x8xf32>
    %147 = vector.shape_cast %146 : vector<2x8xf32> to vector<2x8x1xf32>
    %148 = vector.broadcast %147 : vector<2x8x1xf32> to vector<2x8x8xf32>
    %149 = arith.subf %145, %148 : vector<2x8x8xf32>
    %150 = math.exp %149 : vector<2x8x8xf32>
    %cst_44 = arith.constant dense<0.000000e+00> : vector<2x8xf32>
    %151 = vector.multi_reduction <add>, %150, %cst_44 [2] : vector<2x8x8xf32> to vector<2x8xf32>
    %152 = vector.shape_cast %151 : vector<2x8xf32> to vector<2x8x1xf32>
    %153 = tpu.reciprocal %152 {approx = true} : vector<2x8x1xf32> -> vector<2x8x1xf32>
    %154 = vector.broadcast %153 : vector<2x8x1xf32> to vector<2x8x8xf32>
    %155 = arith.mulf %150, %154 : vector<2x8x8xf32>
    %156 = arith.truncf %155 : vector<2x8x8xf32> to vector<2x8x8xbf16>
    "tpu.trace_start"() <{level = 10 : i32, message = "bqk,bkd->bqd"}> : () -> ()
    %cst_45 = arith.constant dense<0.000000e+00> : vector<2x8x32xf32>
    %157 = tpu.matmul %156, %141, %cst_45 {dimension_numbers = #tpu.dot_dimension_numbers<[2], [1], [1], [2], [0, 0, 0, 1, 1, 2], [0], [0]>} : vector<2x8x8xbf16>, vector<2x8x32xbf16>, vector<2x8x32xf32> -> vector<2x8x32xf32>
    "tpu.trace_stop"() : () -> ()
    %158 = vector.shape_cast %157 : vector<2x8x32xf32> to vector<16x32xf32>
    %159 = tpu.concatenate %80, %106, %132, %158 in 1 : vector<16x32xf32>, vector<16x32xf32>, vector<16x32xf32>, vector<16x32xf32> -> vector<16x128xf32>
    %160 = arith.truncf %159 : vector<16x128xf32> to vector<16x128xbf16>
    %c0_46 = arith.constant 0 : index
    %c0_47 = arith.constant 0 : index
    %c0_48 = arith.constant 0 : index
    %161 = vector.load %arg7[%c0_46, %c0_47, %c0_48] : memref<1x128x128xbf16, #tpu.memory_space<vmem>>, vector<1x128x128xbf16>
    %162 = vector.shape_cast %161 : vector<1x128x128xbf16> to vector<128x128xbf16>
    %cst_49 = arith.constant dense<0.000000e+00> : vector<16x128xf32>
    %163 = tpu.matmul %160, %162, %cst_49 {dimension_numbers = #tpu.dot_dimension_numbers<[1], [0], [0], [1], [0, 0, 1, 1], [], []>} : vector<16x128xbf16>, vector<128x128xbf16>, vector<16x128xf32> -> vector<16x128xf32>
    %c0_50 = arith.constant 0 : index
    %c0_51 = arith.constant 0 : index
    %c0_52 = arith.constant 0 : index
    %164 = vector.load %arg8[%c0_50, %c0_51, %c0_52] : memref<1x1x128xf32, #tpu.memory_space<vmem>>, vector<1x1x128xf32>
    %165 = vector.shape_cast %164 : vector<1x1x128xf32> to vector<1x128xf32>
    %166 = vector.broadcast %165 : vector<1x128xf32> to vector<16x128xf32>
    %167 = arith.addf %163, %166 : vector<16x128xf32>
    %168 = arith.addf %3, %167 : vector<16x128xf32>
    %c0_53 = arith.constant 0 : index
    %c0_54 = arith.constant 0 : index
    %c0_55 = arith.constant 0 : index
    %169 = vector.load %arg9[%c0_53, %c0_54, %c0_55] : memref<1x1x128xf32, #tpu.memory_space<vmem>>, vector<1x1x128xf32>
    %170 = vector.shape_cast %169 : vector<1x1x128xf32> to vector<1x128xf32>
    %c0_56 = arith.constant 0 : index
    %c0_57 = arith.constant 0 : index
    %c0_58 = arith.constant 0 : index
    %171 = vector.load %arg10[%c0_56, %c0_57, %c0_58] : memref<1x1x128xf32, #tpu.memory_space<vmem>>, vector<1x1x128xf32>
    %172 = vector.shape_cast %171 : vector<1x1x128xf32> to vector<1x128xf32>
    %cst_59 = arith.constant dense<0.000000e+00> : vector<16xf32>
    %173 = vector.multi_reduction <add>, %168, %cst_59 [1] : vector<16x128xf32> to vector<16xf32>
    %174 = vector.shape_cast %173 : vector<16xf32> to vector<16x1xf32>
    %cst_60 = arith.constant 1.280000e+02 : f32
    %175 = vector.broadcast %cst_60 : f32 to vector<16x1xf32>
    %176 = arith.divf %174, %175 : vector<16x1xf32>
    %177 = vector.broadcast %176 : vector<16x1xf32> to vector<16x128xf32>
    %178 = arith.subf %168, %177 : vector<16x128xf32>
    %179 = arith.mulf %178, %178 : vector<16x128xf32>
    %cst_61 = arith.constant dense<0.000000e+00> : vector<16xf32>
    %180 = vector.multi_reduction <add>, %179, %cst_61 [1] : vector<16x128xf32> to vector<16xf32>
    %181 = vector.shape_cast %180 : vector<16xf32> to vector<16x1xf32>
    %cst_62 = arith.constant 1.280000e+02 : f32
    %182 = vector.broadcast %cst_62 : f32 to vector<16x1xf32>
    %183 = arith.divf %181, %182 : vector<16x1xf32>
    %184 = vector.broadcast %176 : vector<16x1xf32> to vector<16x128xf32>
    %185 = arith.subf %168, %184 : vector<16x128xf32>
    %cst_63 = arith.constant 9.99999974E-6 : f32
    %186 = vector.broadcast %cst_63 : f32 to vector<16x1xf32>
    %187 = arith.addf %183, %186 : vector<16x1xf32>
    %188 = math.rsqrt %187 : vector<16x1xf32>
    %189 = vector.broadcast %188 : vector<16x1xf32> to vector<16x128xf32>
    %190 = arith.mulf %185, %189 : vector<16x128xf32>
    %191 = vector.broadcast %170 : vector<1x128xf32> to vector<16x128xf32>
    %192 = arith.mulf %190, %191 : vector<16x128xf32>
    %193 = vector.broadcast %172 : vector<1x128xf32> to vector<16x128xf32>
    %194 = arith.addf %192, %193 : vector<16x128xf32>
    %195 = arith.truncf %194 : vector<16x128xf32> to vector<16x128xbf16>
    %c0_64 = arith.constant 0 : index
    %c0_65 = arith.constant 0 : index
    %c0_66 = arith.constant 0 : index
    %196 = vector.load %arg11[%c0_64, %c0_65, %c0_66] : memref<1x128x512xbf16, #tpu.memory_space<vmem>>, vector<1x128x512xbf16>
    %197 = vector.shape_cast %196 : vector<1x128x512xbf16> to vector<128x512xbf16>
    %cst_67 = arith.constant dense<0.000000e+00> : vector<16x512xf32>
    %198 = tpu.matmul %195, %197, %cst_67 {dimension_numbers = #tpu.dot_dimension_numbers<[1], [0], [0], [1], [0, 0, 1, 1], [], []>} : vector<16x128xbf16>, vector<128x512xbf16>, vector<16x512xf32> -> vector<16x512xf32>
    %c0_68 = arith.constant 0 : index
    %c0_69 = arith.constant 0 : index
    %c0_70 = arith.constant 0 : index
    %199 = vector.load %arg12[%c0_68, %c0_69, %c0_70] : memref<1x1x512xf32, #tpu.memory_space<vmem>>, vector<1x1x512xf32>
    %200 = vector.shape_cast %199 : vector<1x1x512xf32> to vector<1x512xf32>
    %201 = vector.broadcast %200 : vector<1x512xf32> to vector<16x512xf32>
    %202 = arith.addf %198, %201 : vector<16x512xf32>
    %cst_71 = arith.constant 5.000000e-01 : f32
    %203 = vector.broadcast %cst_71 : f32 to vector<16x512xf32>
    %204 = arith.mulf %203, %202 : vector<16x512xf32>
    %cst_72 = arith.constant 4.471500e-02 : f32
    %205 = vector.broadcast %cst_72 : f32 to vector<16x512xf32>
    %206 = arith.mulf %205, %202 : vector<16x512xf32>
    %207 = arith.mulf %206, %202 : vector<16x512xf32>
    %208 = arith.mulf %207, %202 : vector<16x512xf32>
    %209 = arith.addf %202, %208 : vector<16x512xf32>
    %cst_73 = arith.constant 0.797884583 : f32
    %210 = vector.broadcast %cst_73 : f32 to vector<16x512xf32>
    %211 = arith.mulf %210, %209 : vector<16x512xf32>
    %212 = math.tanh %211 : vector<16x512xf32>
    %cst_74 = arith.constant 1.000000e+00 : f32
    %213 = vector.broadcast %cst_74 : f32 to vector<16x512xf32>
    %214 = arith.addf %213, %212 : vector<16x512xf32>
    %215 = arith.mulf %204, %214 : vector<16x512xf32>
    %216 = arith.truncf %215 : vector<16x512xf32> to vector<16x512xbf16>
    %c0_75 = arith.constant 0 : index
    %c0_76 = arith.constant 0 : index
    %c0_77 = arith.constant 0 : index
    %217 = vector.load %arg13[%c0_75, %c0_76, %c0_77] : memref<1x512x128xbf16, #tpu.memory_space<vmem>>, vector<1x512x128xbf16>
    %218 = vector.shape_cast %217 : vector<1x512x128xbf16> to vector<512x128xbf16>
    %cst_78 = arith.constant dense<0.000000e+00> : vector<16x128xf32>
    %219 = tpu.matmul %216, %218, %cst_78 {dimension_numbers = #tpu.dot_dimension_numbers<[1], [0], [0], [1], [0, 0, 1, 1], [], []>} : vector<16x512xbf16>, vector<512x128xbf16>, vector<16x128xf32> -> vector<16x128xf32>
    %c0_79 = arith.constant 0 : index
    %c0_80 = arith.constant 0 : index
    %c0_81 = arith.constant 0 : index
    %220 = vector.load %arg14[%c0_79, %c0_80, %c0_81] : memref<1x1x128xf32, #tpu.memory_space<vmem>>, vector<1x1x128xf32>
    %221 = vector.shape_cast %220 : vector<1x1x128xf32> to vector<1x128xf32>
    %222 = vector.broadcast %221 : vector<1x128xf32> to vector<16x128xf32>
    %223 = arith.addf %219, %222 : vector<16x128xf32>
    %224 = arith.addf %168, %223 : vector<16x128xf32>
    %c0_82 = arith.constant 0 : index
    %c0_83 = arith.constant 0 : index
    %225 = vector.load %arg17[%c0_82, %c0_83] : memref<16x128xf32, #tpu.memory_space<vmem>>, vector<16x128xf32>
    tpu.vector_store %arg17[%c0_82, %c0_83], %224 {strides = array<i32>} : memref<16x128xf32, #tpu.memory_space<vmem>>, vector<16x128xf32>,
    %c1_i32 = arith.constant 1 : i32
    %226 = arith.cmpi eq, %arg0, %c1_i32 : i32
    %227 = arith.extui %226 : i1 to i32
    %c0_i32_84 = arith.constant 0 : i32
    %228 = arith.cmpi ne, %227, %c0_i32_84 : i32
    scf.if %228 {
      %c0_85 = arith.constant 0 : index
      %c0_86 = arith.constant 0 : index
      %229 = vector.load %arg15[%c0_85, %c0_86] : memref<1x128xf32, #tpu.memory_space<vmem>>, vector<1x128xf32>
      %c0_87 = arith.constant 0 : index
      %c0_88 = arith.constant 0 : index
      %230 = vector.load %arg16[%c0_87, %c0_88] : memref<1x128xf32, #tpu.memory_space<vmem>>, vector<1x128xf32>
      %cst_89 = arith.constant dense<0.000000e+00> : vector<16xf32>
      %231 = vector.multi_reduction <add>, %224, %cst_89 [1] : vector<16x128xf32> to vector<16xf32>
      %232 = vector.shape_cast %231 : vector<16xf32> to vector<16x1xf32>
      %cst_90 = arith.constant 1.280000e+02 : f32
      %233 = vector.broadcast %cst_90 : f32 to vector<16x1xf32>
      %234 = arith.divf %232, %233 : vector<16x1xf32>
      %235 = vector.broadcast %234 : vector<16x1xf32> to vector<16x128xf32>
      %236 = arith.subf %224, %235 : vector<16x128xf32>
      %237 = arith.mulf %236, %236 : vector<16x128xf32>
      %cst_91 = arith.constant dense<0.000000e+00> : vector<16xf32>
      %238 = vector.multi_reduction <add>, %237, %cst_91 [1] : vector<16x128xf32> to vector<16xf32>
      %239 = vector.shape_cast %238 : vector<16xf32> to vector<16x1xf32>
      %cst_92 = arith.constant 1.280000e+02 : f32
      %240 = vector.broadcast %cst_92 : f32 to vector<16x1xf32>
      %241 = arith.divf %239, %240 : vector<16x1xf32>
      %242 = vector.broadcast %234 : vector<16x1xf32> to vector<16x128xf32>
      %243 = arith.subf %224, %242 : vector<16x128xf32>
      %cst_93 = arith.constant 9.99999974E-6 : f32
      %244 = vector.broadcast %cst_93 : f32 to vector<16x1xf32>
      %245 = arith.addf %241, %244 : vector<16x1xf32>
      %246 = math.rsqrt %245 : vector<16x1xf32>
      %247 = vector.broadcast %246 : vector<16x1xf32> to vector<16x128xf32>
      %248 = arith.mulf %243, %247 : vector<16x128xf32>
      %249 = vector.broadcast %229 : vector<1x128xf32> to vector<16x128xf32>
      %250 = arith.mulf %248, %249 : vector<16x128xf32>
      %251 = vector.broadcast %230 : vector<1x128xf32> to vector<16x128xf32>
      %252 = arith.addf %250, %251 : vector<16x128xf32>
      %c0_94 = arith.constant 0 : index
      %c0_95 = arith.constant 0 : index
      %253 = vector.load %arg17[%c0_94, %c0_95] : memref<16x128xf32, #tpu.memory_space<vmem>>, vector<16x128xf32>
      tpu.vector_store %arg17[%c0_94, %c0_95], %252 {strides = array<i32>} : memref<16x128xf32, #tpu.memory_space<vmem>>, vector<16x128xf32>,
    } else {
    }
    return
  }
  func.func @transform_0(%arg0: i32) -> (i32, i32) {
    %c0_i32 = arith.constant 0 : i32
    %c0_i32_0 = arith.constant 0 : i32
    %c0_i32_1 = arith.constant 0 : i32
    return %c0_i32, %c0_i32_0 : i32, i32
  }
  func.func @transform_1(%arg0: i32) -> (i32, i32) {
    %c0_i32 = arith.constant 0 : i32
    %c0_i32_0 = arith.constant 0 : i32
    %c0_i32_1 = arith.constant 0 : i32
    return %c0_i32, %c0_i32_0 : i32, i32
  }
  func.func @transform_2(%arg0: i32) -> (i32, i32, i32) {
    %c0_i32 = arith.constant 0 : i32
    %c0_i32_0 = arith.constant 0 : i32
    %c0_i32_1 = arith.constant 0 : i32
    return %arg0, %c0_i32, %c0_i32_0 : i32, i32, i32
  }
  func.func @transform_3(%arg0: i32) -> (i32, i32, i32) {
    %c0_i32 = arith.constant 0 : i32
    %c0_i32_0 = arith.constant 0 : i32
    %c0_i32_1 = arith.constant 0 : i32
    return %arg0, %c0_i32, %c0_i32_0 : i32, i32, i32
  }
  func.func @transform_4(%arg0: i32) -> (i32, i32, i32) {
    %c0_i32 = arith.constant 0 : i32
    %c0_i32_0 = arith.constant 0 : i32
    %c0_i32_1 = arith.constant 0 : i32
    return %arg0, %c0_i32, %c0_i32_0 : i32, i32, i32
  }
  func.func @transform_5(%arg0: i32) -> (i32, i32, i32) {
    %c0_i32 = arith.constant 0 : i32
    %c0_i32_0 = arith.constant 0 : i32
    %c0_i32_1 = arith.constant 0 : i32
    return %arg0, %c0_i32, %c0_i32_0 : i32, i32, i32
  }
  func.func @transform_6(%arg0: i32) -> (i32, i32, i32) {
    %c0_i32 = arith.constant 0 : i32
    %c0_i32_0 = arith.constant 0 : i32
    %c0_i32_1 = arith.constant 0 : i32
    return %arg0, %c0_i32, %c0_i32_0 : i32, i32, i32
  }
  func.func @transform_7(%arg0: i32) -> (i32, i32, i32) {
    %c0_i32 = arith.constant 0 : i32
    %c0_i32_0 = arith.constant 0 : i32
    %c0_i32_1 = arith.constant 0 : i32
    return %arg0, %c0_i32, %c0_i32_0 : i32, i32, i32
  }
  func.func @transform_8(%arg0: i32) -> (i32, i32, i32) {
    %c0_i32 = arith.constant 0 : i32
    %c0_i32_0 = arith.constant 0 : i32
    %c0_i32_1 = arith.constant 0 : i32
    return %arg0, %c0_i32, %c0_i32_0 : i32, i32, i32
  }
  func.func @transform_9(%arg0: i32) -> (i32, i32, i32) {
    %c0_i32 = arith.constant 0 : i32
    %c0_i32_0 = arith.constant 0 : i32
    %c0_i32_1 = arith.constant 0 : i32
    return %arg0, %c0_i32, %c0_i32_0 : i32, i32, i32
  }
  func.func @transform_10(%arg0: i32) -> (i32, i32, i32) {
    %c0_i32 = arith.constant 0 : i32
    %c0_i32_0 = arith.constant 0 : i32
    %c0_i32_1 = arith.constant 0 : i32
    return %arg0, %c0_i32, %c0_i32_0 : i32, i32, i32
  }
  func.func @transform_11(%arg0: i32) -> (i32, i32, i32) {
    %c0_i32 = arith.constant 0 : i32
    %c0_i32_0 = arith.constant 0 : i32
    %c0_i32_1 = arith.constant 0 : i32
    return %arg0, %c0_i32, %c0_i32_0 : i32, i32, i32
  }
  func.func @transform_12(%arg0: i32) -> (i32, i32, i32) {
    %c0_i32 = arith.constant 0 : i32
    %c0_i32_0 = arith.constant 0 : i32
    %c0_i32_1 = arith.constant 0 : i32
    return %arg0, %c0_i32, %c0_i32_0 : i32, i32, i32
  }
  func.func @transform_13(%arg0: i32) -> (i32, i32, i32) {
    %c0_i32 = arith.constant 0 : i32
    %c0_i32_0 = arith.constant 0 : i32
    %c0_i32_1 = arith.constant 0 : i32
    return %arg0, %c0_i32, %c0_i32_0 : i32, i32, i32
  }
  func.func @transform_14(%arg0: i32) -> (i32, i32) {
    %c0_i32 = arith.constant 0 : i32
    %c0_i32_0 = arith.constant 0 : i32
    %c0_i32_1 = arith.constant 0 : i32
    return %c0_i32, %c0_i32_0 : i32, i32
  }
  func.func @transform_15(%arg0: i32) -> (i32, i32) {
    %c0_i32 = arith.constant 0 : i32
    %c0_i32_0 = arith.constant 0 : i32
    %c0_i32_1 = arith.constant 0 : i32
    return %c0_i32, %c0_i32_0 : i32, i32
  }
  func.func @transform_16(%arg0: i32) -> (i32, i32) {
    %c0_i32 = arith.constant 0 : i32
    %c0_i32_0 = arith.constant 0 : i32
    %c0_i32_1 = arith.constant 0 : i32
    return %c0_i32, %c0_i32_0 : i32, i32
  }
}

</mosaic_0001>

<bundles_post_ra>
// kernel: _lambda_.3
= control target key start
LH: loop header
LB: loop body
LE: loop exit
PB: predicated region body
PF: predicated region fallthrough
CT: control target
= control target key end

     0   :  { %7 = vsyncpa [#allocation4], 0  ;;  %s756_s0 = inlined_call_operand.vmem [shape: f32[16,128], index: 0, kind: input, shape index: {}]   ;;  %s757_s1 = inlined_call_operand.vmem [shape: bf16[128,256], index: 1, kind: input, shape index: {}]   ;;  %s758_s2 = inlined_call_operand.hbm [shape: f32[16,256], index: 2, kind: output, shape index: {}]  }
   0x1   :  { %9 = vsyncpa [#allocation4 + $0x1], 0  ;;  %s621_s9 = smov 0   ;;  %s623_s10 = smov 0  }
   0x2   :  { %s625_s11 = smov 0   ;;  %s627_s12 = smov 0  }
   0x3 LB: > { %s436_s13 = sadd.s32 4294967295, %s598_s12   ;;  %s437_s14 = sadd.s32 4294967294, %s598_s12   ;;  %s598_s12 = sphi %s627_s12, %s764_s12   ;;  %s594_s11 = sphi %s625_s11, %s763_s11   ;;  %s590_s10 = sphi %s623_s10, %s762_s10   ;;  %s586_s9 = sphi %s621_s9, %s761_s9  }
   0x4   : > { %s644_s15 = sadd.s32 1, %s598_s12   ;;  %s43_s16 = sadd.s32 1, %s594_s11 }
   0x5   : > { %s40_s17 = ssub.s32 %s598_s12, %s644_s15  ;;  %p50_p0 = scmp.ne.s32.totalorder %s594_s11, %s590_s10 }
   0x6   : > { %p41_p1 = scmp.eq.s32.totalorder %s40_s17, 0  ;;  %p51_p2 = scmp.eq.s32.totalorder %s598_s12, 0 }
   0x7   : > { %p80_p3 = scmp.eq.s32.totalorder %s436_s13, 1  ;;  %p85_p4 = scmp.ne.s32.totalorder %s590_s10, %s586_s9 }
   0x8   : > { %s657_s18 = scalar_select %p41_p1, %s594_s11, %s43_s16  }
   0x9   : > { %p52_p5 = por %p51_p2, %p50_p0  ;;  %p659_p6 = por %p80_p3, %p50_p0 }
   0xa   : > { %p86_p7 = scmp.eq.s32.totalorder %s437_s14, 1  ;;  %p439_p9 = scmp.ge.s32.totalorder %s598_s12, 2 }
   0xc   : > { %p663_p8 = por %p86_p7, %p85_p4  ;;  %105 = sbr.rel (%p439_p9) target bundleno = 31 (0x1f), region = 20 }
  0x11   : > { %108 = sbr.rel (!%p52_p5) target bundleno = 31 (0x1f), region = 24  ;;  %s110_s21 = sand.u32 (%p52_p5), 1, %s594_s11  }
  0x12   : > { %s441_s22 = sshll.u32 (%p52_p5), %s598_s12, 2  ;;  %s440_s23 = sshll.u32 (%p52_p5), %s110_s21, 6 }
  0x13   : > { %s675_s26 = scalar_lea.vmem (%p52_p5), %s757_s1, %s441_s22  ;;  %s112_s27 = scalar_lea.vmem (%p52_p5), [#allocation2], %s440_s23 }
  0x14   : > { %v131_v0 = vld [vmem:[%s675_s26] sm:$0xf] (%p52_p5)  ;;  %v133_v1 = vld [vmem:[%s675_s26 + $0x8] sm:$0xf] (%p52_p5)  ;;  %v135_v2 = vld [vmem:[%s675_s26 + $0x10] sm:$0xf] (%p52_p5) }
  0x15   : > { %132 = vst [vmem:[%s112_s27] sm:$0xf] (%p52_p5), %v131_v0  ;;  %134 = vst [vmem:[%s112_s27 + $0x4] sm:$0xf] (%p52_p5), %v133_v1  ;;  %v137_v3 = vld [vmem:[%s675_s26 + $0x18] sm:$0xf] (%p52_p5) }
  0x16   : > { %v139_v4 = vld [vmem:[%s675_s26 + $0x20] sm:$0xf]  ;;  %136 = vst [vmem:[%s112_s27 + $0x8] sm:$0xf] %v135_v2  ;;  %138 = vst [vmem:[%s112_s27 + $0xc] sm:$0xf] %v137_v3 }
  0x17   : > { %140 = vst [vmem:[%s112_s27 + $0x10] sm:$0xf] %v139_v4  ;;  %v141_v5 = vld [vmem:[%s675_s26 + $0x28] sm:$0xf]  ;;  %v143_v6 = vld [vmem:[%s675_s26 + $0x30] sm:$0xf] }
  0x18   : > { %v145_v7 = vld [vmem:[%s675_s26 + $0x38] sm:$0xf]  ;;  %142 = vst [vmem:[%s112_s27 + $0x14] sm:$0xf] %v141_v5  ;;  %144 = vst [vmem:[%s112_s27 + $0x18] sm:$0xf] %v143_v6 }
  0x19   : > { %146 = vst [vmem:[%s112_s27 + $0x1c] sm:$0xf] %v145_v7  ;;  %v147_v8 = vld [vmem:[%s675_s26 + $0x40] sm:$0xf]  ;;  %v149_v9 = vld [vmem:[%s675_s26 + $0x48] sm:$0xf] }
  0x1a   : > { %v151_v10 = vld [vmem:[%s675_s26 + $0x50] sm:$0xf]  ;;  %148 = vst [vmem:[%s112_s27 + $0x20] sm:$0xf] %v147_v8  ;;  %150 = vst [vmem:[%s112_s27 + $0x24] sm:$0xf] %v149_v9 }
  0x1b   : > { %152 = vst [vmem:[%s112_s27 + $0x28] sm:$0xf] %v151_v10  ;;  %v153_v11 = vld [vmem:[%s675_s26 + $0x58] sm:$0xf]  ;;  %v155_v12 = vld [vmem:[%s675_s26 + $0x60] sm:$0xf] }
  0x1c   : > { %v157_v13 = vld [vmem:[%s675_s26 + $0x68] sm:$0xf]  ;;  %154 = vst [vmem:[%s112_s27 + $0x2c] sm:$0xf] %v153_v11  ;;  %156 = vst [vmem:[%s112_s27 + $0x30] sm:$0xf] %v155_v12 }
  0x1d   : > { %158 = vst [vmem:[%s112_s27 + $0x34] sm:$0xf] %v157_v13  ;;  %v159_v14 = vld [vmem:[%s675_s26 + $0x70] sm:$0xf]  ;;  %v161_v15 = vld [vmem:[%s675_s26 + $0x78] sm:$0xf] }
  0x1e   : > { %160 = vst [vmem:[%s112_s27 + $0x38] sm:$0xf] %v159_v14  ;;  %162 = vst [vmem:[%s112_s27 + $0x3c] sm:$0xf] %v161_v15 }
  0x1f PF: > { %p442_p10 = scmp.ge.s32.totalorder %s598_s12, 1  ;;  %p217_p11 = scmp.lt.s32.totalorder %s598_s12, 3 }
  0x21   : > { %p218_p12 = pnand %p442_p10, %p217_p11 }
  0x22   : > { %s696_s28 = sand.u32 (!%p218_p12), 1, %s590_s10   ;;  %s454_s16 = sshll.u32 (!%p218_p12), %s436_s13, 7 }
  0x23   : > { %221 = sbr.rel (%p218_p12) target bundleno = 286 (0x11e), region = 65  ;;  %s443_s29 = sshll.u32 (!%p218_p12), %s696_s28, 6 }
  0x24   : > { %s226_s30 = scalar_lea.vmem (!%p218_p12), [#allocation2], %s443_s29  ;;  %s444_s7 = sshll.u32 (!%p218_p12), %s696_s28, 4 }
  0x25   : > { %s244_s8 = scalar_lea.vmem (!%p218_p12), [#allocation3], %s444_s7  ;;  %s713_s22 = scalar_lea.hbm (!%p218_p12), %s758_s2, %s454_s16 }
  0x26   : > { %s369_s14 = sshll.u32 (!%p218_p12), %s244_s8, 4  ;;  %s357_s23 = scalar_lea.sflag (!%p218_p12), [#allocation4], %s696_s28  ;;  %s708_s14 = int_to_ptr.vmem [resolvable:$true] %s369_s14 }
  0x27   : > { %s538_s24 = scalar_lea.vmem (!%p218_p12), %s708_s14, 256  ;;  %s602_s13 = smov (!%p218_p12), [#allocation3]  }
  0x28   : > { %v600_v16 = vmov 0.0   ;;  %vm601_vm0 = vmmov 0   ;;  %v530_v17 = vld [vmem:[%s226_s30 + $0x38] sm:$0xff]   ;;  %v531_v18 = vld [vmem:[%s226_s30 + $0x30] sm:$0xff]   ;;  %v532_v19 = vld [vmem:[%s226_s30 + $0x28] sm:$0xff]   ;;  %p539_p13 = scmp.ne.s32.totalorder %s708_s14, %s538_s24  ;;  %s542_s25 = sshll.u32 %s602_s13, 4  ;;  %s543_s25 = int_to_ptr.vmem [resolvable:$false] %s542_s25 }
  0x29   : > { %466 = vmatprep.subr.bf16.mxu0 %v600_v16  ;;  %482 = vmatprep.mubr.msk.bf16.mxu0 %vm601_vm0, %v600_v16  ;;  %v533_v20 = vld [vmem:[%s226_s30 + $0x20] sm:$0xff]   ;;  %v534_v21 = vld [vmem:[%s226_s30 + $0x18] sm:$0xff]   ;;  %v535_v22 = vld [vmem:[%s226_s30 + $0x10] sm:$0xff]   ;;  %s544_s26 = scalar_lea.vmem %s543_s25, 512  ;;  %p545_p2 = scmp.lt.s32.totalorder %s708_s14, %s543_s25 }
  0x2a   : > { %467 = vmatpush3.bf16.msra.mxu0 %v530_v17  ;;  %v536_v23 = vld [vmem:[%s226_s30 + $0x8] sm:$0xff]   ;;  %v537_v24 = vld [vmem:[%s226_s30] sm:$0xff]   ;;  %p540_p0 = pnand %p539_p13, %p659_p6  ;;  %p546_p3 = scmp.lt.s32.totalorder %s544_s26, %s538_s24 }
  0x2b   : > { %468 = vmatprep.subr.bf16.mxu0 %v600_v16  ;;  %v246_v25 = vld [vmem:[%s756_s0] sm:$0xff]  ;;  %v247_v26 = vld [vmem:[%s756_s0 + $0x8] sm:$0xff] }
  0x2c   : > { %v248_v27 = vpack.c.bf16 %v247_v26, %v246_v25  ;;  %p541_p1 = pneg %p540_p0  ;;  %p547_p4 = por %p546_p3, %p545_p2 }
  0x2e   : > { %469 = vmatpush3.bf16.msra.mxu0 %v531_v18  ;;  %p548_p5 = pnand %p547_p4, %p541_p1 }
  0x2f   : > { %470 = vmatprep.subr.bf16.mxu0 %v600_v16 }
  0x32   : > { %471 = vmatpush3.bf16.msra.mxu0 %v532_v19 }
  0x33   : > { %472 = vmatprep.subr.bf16.mxu0 %v600_v16 }
  0x36   : > { %473 = vmatpush3.bf16.msra.mxu0 %v533_v20 }
  0x37   : > { %474 = vmatprep.subr.bf16.mxu0 %v600_v16 }
  0x3a   : > { %475 = vmatpush3.bf16.msra.mxu0 %v534_v21 }
  0x3b   : > { %476 = vmatprep.subr.bf16.mxu0 %v600_v16 }
  0x3e   : > { %477 = vmatpush3.bf16.msra.mxu0 %v535_v22 }
  0x3f   : > { %478 = vmatprep.subr.bf16.mxu0 %v600_v16 }
  0x42   : > { %479 = vmatpush3.bf16.msra.mxu0 %v536_v23 }
  0x43   : > { %480 = vmatprep.subr.bf16.mxu0 %v600_v16 }
  0x46   : > { %481 = vmatpush3.bf16.msra.mxu0 %v537_v24 }
  0x49   : > { %483 = vmatmul.mubr.bf16.vlgmr.msra.gmra.mxu0 %v248_v27 }
 0x109   : > { %v347_v28 = vpop.f32.mrf.mxu0 }
 0x10a   : > { %354 = vst [vmem:[%s244_s8] sm:$0xff] %v347_v28 }
 0x10b   : > { %v484_v29 = vpop.f32.mrf.mxu0 }
 0x10d   : > { %v350_v30 = vpop.f32.mrf.mxu0 }
 0x10e   : > { %355 = vst [vmem:[%s244_s8 + $0x8] sm:$0xff] %v350_v30 }
 0x10f   : > { %v485_v31 = vpop.f32.mrf.mxu0 }
 0x110   : > { %551 = shalt.err (!%p548_p5)
}
 0x111   : > { %s552_s27 = scalar_lea.hbm %s713_s22, 256  ;;  %s556_s3 = scalar_lea.hbm %s758_s2, 512 }
 0x112   : > { %p553_p7 = scmp.ne.s32.totalorder %s713_s22, %s552_s27  ;;  %p557_p12 = scmp.lt.s32.totalorder %s713_s22, %s758_s2 }
 0x113   : > { %p558_p13 = scmp.lt.s32.totalorder %s556_s3, %s552_s27 }
 0x114   : > { %p554_p10 = pnand %p553_p7, %p659_p6 }
 0x115   : > { %p559_p0 = por %p558_p13, %p557_p12 }
 0x116   : > { %p555_p11 = pneg %p554_p10 }
 0x118   : > { %p560_p1 = pnand %p559_p0, %p555_p11 }
 0x11a   : > { %563 = shalt.err (!%p560_p1)
}
 0x11b   : > { %s603_s6 = smov 128   ;;  %s604_s7 = smov 256  }
 0x11c   : > { %s605_s8 = smov 8  }
 0x11d   : > { %486 = dma.vmem_to_hbm [thread:$0]  (%p659_p6), %s708_s14, 256, %s713_s22, %s357_s23, %s603_s6, %s604_s7, %s605_s8  }
 0x11e PF: > { %s384_s16 = sand.u32 1, %s586_s9   ;;  %p489_p2 = pnand %p439_p9, %p663_p8 }
 0x11f   : > { %s385_s17 = scalar_lea.sflag [#allocation4], %s384_s16 }
 0x120   : > { %p490_p3 = pneg %p489_p2 }
 0x122   : > { %581 = dma.done.wait (%p490_p3), %s385_s17, 256  }
 0x123   : > { %583 = vsyncadd (%p490_p3), %s385_s17, 4294967040  ;;  %p12_p4 = scmp.ge.s32.totalorder %s644_s15, 4   ;;  %s761_s9 = smov %s590_s10 }
 0x124   : > { %s762_s10 = smov %s594_s11  ;;  %s763_s11 = smov %s657_s18 }
 0x125   : > { %s764_s12 = smov %s644_s15  ;;  %14 = sbr.rel (!%p12_p4) target bundleno = 3 (0x3), region = 109 }
 0x12a   :  { %390 = vsyncpa [#allocation4], 1 }
 0x12b   :  { %392 = vsyncpa [#allocation4 + $0x1], 1 }

// kernel: _lambda_.2
= control target key start
LH: loop header
LB: loop body
LE: loop exit
PB: predicated region body
PF: predicated region fallthrough
CT: control target
= control target key end

     0   :  { %s4694_s0 = inlined_call_operand.vmem [shape: f32[16,128], index: 0, kind: input, shape index: {}]   ;;  %s4695_s1 = inlined_call_operand.vmem [shape: f32[2,8], index: 1, kind: input, shape index: {}]   ;;  %s4696_s2 = inlined_call_operand.vmem [shape: f32[2,1,128], index: 2, kind: input, shape index: {}, may-alias: {2,8}]   ;;  %s4697_s3 = inlined_call_operand.vmem [shape: f32[2,1,128], index: 3, kind: input, shape index: {}, may-alias: {3,7,9,13}]   ;;  %s4698_s4 = inlined_call_operand.hbm [shape: bf16[2,128,384], index: 4, kind: input, shape index: {}]   ;;  %s4699_s5 = inlined_call_operand.vmem [shape: f32[2,1,384], index: 5, kind: input, shape index: {}]   ;;  %s4700_s6 = inlined_call_operand.vmem [shape: bf16[2,128,128], index: 6, kind: input, shape index: {}]   ;;  %s4701_s7 = inlined_call_operand.vmem [shape: f32[2,1,128], index: 7, kind: input, shape index: {}, may-alias: {3,7,9,13}]   ;;  %s4702_s8 = inlined_call_operand.vmem [shape: f32[2,1,128], index: 8, kind: input, shape index: {}, may-alias: {2,8}]   ;;  %s4703_s9 = inlined_call_operand.vmem [shape: f32[2,1,128], index: 9, kind: input, shape index: {}, may-alias: {3,7,9,13}]   ;;  %s4704_s10 = inlined_call_operand.hbm [shape: bf16[2,128,512], index: 10, kind: input, shape index: {}]   ;;  %s4705_s11 = inlined_call_operand.vmem [shape: f32[2,1,512], index: 11, kind: input, shape index: {}]   ;;  %s4706_s12 = inlined_call_operand.hbm [shape: bf16[2,512,128], index: 12, kind: input, shape index: {}]   ;;  %s4707_s13 = inlined_call_operand.vmem [shape: f32[2,1,128], index: 13, kind: input, shape index: {}, may-alias: {3,7,9,13}]   ;;  %s4708_s14 = inlined_call_operand.vmem [shape: f32[1,128], index: 14, kind: input, shape index: {}]   ;;  %s4709_s15 = inlined_call_operand.vmem [shape: f32[1,128], index: 15, kind: input, shape index: {}]   ;;  %s4710_s16 = inlined_call_operand.vmem [shape: f32[16,128], index: 16, kind: output, shape index: {}]  }
   0x1   :  { %4721 = sst [smem:[#allocation12_spill]] %s4694_s0 }
   0x2   :  { %4722 = sst [smem:[#allocation13_spill]] %s4695_s1 }
   0x3   :  { %4723 = sst [smem:[#allocation14_spill]] %s4698_s4 }
   0x4   :  { %4724 = sst [smem:[#allocation15_spill]] %s4700_s6 }
   0x5   :  { %4725 = sst [smem:[#allocation16_spill]] %s4704_s10 }
   0x6   :  { %4726 = sst [smem:[#allocation17_spill]] %s4705_s11 }
   0x7   :  { %4727 = sst [smem:[#allocation18_spill]] %s4706_s12 }
   0x8   :  { %4728 = sst [smem:[#allocation19_spill]] %s4707_s13 }
   0x9   :  { %4729 = sst [smem:[#allocation20_spill]] %s4708_s14 }
   0xa   :  { %4730 = sst [smem:[#allocation21_spill]] %s4709_s15 }
   0xb   :  { %4731 = sst [smem:[#allocation22_spill]] %s4710_s16 }
   0xc   :  { %21 = vsyncpa [#allocation3], 0 }
   0xd   :  { %23 = vsyncpa [#allocation3 + $0x1], 0 }
   0xe   :  { %24 = vsyncpa [#allocation5], 0 }
   0xf   :  { %26 = vsyncpa [#allocation5 + $0x1], 0  ;;  %s3993_s21 = smov 0   ;;  %s3995_s22 = smov 0  }
  0x10   :  { %s3997_s23 = smov 0   ;;  %s3999_s24 = smov 0  }
  0x11 LB: > { %4732 = sst [smem:[#allocation9_spill]] %s3885_s23  ;;  %s4012_s25 = sadd.s32 4294967295, %s3889_s24   ;;  %s3889_s24 = sphi %s3999_s24, %s4760_s24   ;;  %s3885_s23 = sphi %s3997_s23, %s4762_s23   ;;  %s3881_s22 = sphi %s3995_s22, %s4764_s22   ;;  %s3877_s21 = sphi %s3993_s21, %s4763_s21  }
  0x12   : > { %s4015_s26 = sadd.s32 1, %s3889_s24   ;;  %s133_s28 = sadd.s32 1, %s3885_s23 }
  0x13   : > { %4733 = sst [smem:[#allocation10_spill]] %s4015_s26  ;;  %s130_s27 = ssub.s32 %s3889_s24, %s4015_s26 }
  0x14   : > { %p131_p0 = scmp.eq.s32.totalorder %s130_s27, 0  ;;  %p140_p1 = scmp.ne.s32.totalorder %s3885_s23, %s3881_s22 }
  0x15   : > { %p141_p2 = scmp.eq.s32.totalorder %s3889_s24, 0  ;;  %p146_p3 = scmp.ne.s32.totalorder %s3881_s22, %s3877_s21 }
  0x16   : > { %s4025_s29 = scalar_select %p131_p0, %s3885_s23, %s133_s28  }
  0x17   : > { %p142_p4 = por %p141_p2, %p140_p1  ;;  %p147_p5 = scmp.eq.s32.totalorder %s4012_s25, 0 }
  0x18   : > { %4734 = sst [smem:[#allocation11_spill]] %s4025_s29  ;;  %p3523_p6 = scmp.lt.s32.totalorder %s3889_s24, 2 }
  0x19   : > { %p4029_p7 = por %p147_p5, %p146_p3  ;;  %s4034_s0 = sand.u32 1, %s3885_s23  }
  0x1a   : > { %p4036_p8 = pnand %p3523_p6, %p142_p4  ;;  %s545_s18 = sand.u32 1, %s3889_s24  }
  0x1b   : > { %s4735_s30 = scalar_select %p4029_p7, 1, 0 }
  0x1c   : > { %s4715_s19 = sshll.u32 %s4034_s0, 8  ;;  %s4716_s20 = sshll.u32 %s3889_s24, 12 }
  0x1d   : > { %s549_s21 = scalar_lea.vmem [#allocation4], %s4715_s19  ;;  %s4737_s10 = sld [smem:[#allocation16_spill]] }
  0x1e   : > { %s556_s27 = sshll.u32 %s549_s21, 4  ;;  %s4054_s23 = scalar_lea.sflag [#allocation5], %s545_s18  ;;  %s4052_s27 = int_to_ptr.vmem [resolvable:$true] %s556_s27 }
  0x1f   : > { %p4060_p10 = pneg %p4036_p8 }
  0x23   : > { %s4050_s26 = scalar_lea.hbm %s4737_s10, %s4716_s20  ;;  %s3772_s28 = scalar_lea.hbm %s4737_s10, 8192 }
  0x24   : > { %s3767_s15 = scalar_lea.hbm %s4050_s26, 4096  ;;  %p3773_p13 = scmp.lt.s32.totalorder %s4050_s26, %s4737_s10 }
  0x25   : > { %p3768_p9 = scmp.ne.s32.totalorder %s4050_s26, %s3767_s15  ;;  %p3774_p0 = scmp.lt.s32.totalorder %s3772_s28, %s3767_s15 }
  0x27   : > { %p3770_p11 = pnand %p4060_p10, %p3768_p9  ;;  %p3775_p1 = por %p3774_p0, %p3773_p13 }
  0x29   : > { %p3771_p12 = pneg %p3770_p11 }
  0x2b   : > { %p3776_p2 = pnand %p3775_p1, %p3771_p12 }
  0x2d   : > { %3779 = shalt.err (!%p3776_p2)
}
  0x2e   : > { %s3780_s18 = scalar_lea.vmem %s4052_s27, 4096  ;;  %s3891_s1 = smov [#allocation4]  }
  0x2f   : > { %p3781_p3 = scmp.ne.s32.totalorder %s4052_s27, %s3780_s18  ;;  %s3785_s29 = sshll.u32 %s3891_s1, 4  ;;  %s3786_s29 = int_to_ptr.vmem [resolvable:$false] %s3785_s29 }
  0x30   : > { %s3787_s21 = scalar_lea.vmem %s3786_s29, 8192  ;;  %p3788_p6 = scmp.lt.s32.totalorder %s4052_s27, %s3786_s29 }
  0x31   : > { %p3783_p4 = pnand %p3781_p3, %p4060_p10  ;;  %p3789_p9 = scmp.lt.s32.totalorder %s3787_s21, %s3780_s18 }
  0x33   : > { %p3784_p5 = pneg %p3783_p4  ;;  %p3790_p11 = por %p3789_p9, %p3788_p6 }
  0x35   : > { %p3791_p7 = pnand %p3790_p11, %p3784_p5 }
  0x37   : > { %3794 = shalt.err (!%p3791_p7)
}
  0x38   : > { %s3892_s15 = smov 256   ;;  %s3893_s1 = smov 16  }
  0x39   : > { %3519 = dma.hbm_to_vmem [thread:$0]  (!%p4036_p8), %s4050_s26, 4096, %s4052_s27, %s4054_s23, %s3892_s15, %s3892_s15, %s3893_s1  }
  0x3a   : > { %s4739_s19 = sshll.u32 %s3889_s24, 12  ;;  %s4740_s12 = sld [smem:[#allocation18_spill]] }
  0x3b   : > { %s4741_s29 = sshll.u32 %s4034_s0, 8  ;;  %p3140_p7 = scmp.ge.s32.totalorder %s3889_s24, 1 }
  0x3c   : > { %s577_s21 = scalar_lea.vmem [#allocation6], %s4741_s29  ;;  %p598_p12 = scmp.lt.s32.totalorder %s3889_s24, 3 }
  0x3d   : > { %s584_s10 = sshll.u32 %s577_s21, 4  ;;  %s3503_s16 = smul.u32 192, %s4034_s0  ;;  %s4093_s10 = int_to_ptr.vmem [resolvable:$true] %s584_s10 }
  0x3e   : > { %p4097_p13 = pnand %p3140_p7, %p598_p12  ;;  %s3504_s26 = smul.u32 3072, %s3889_s24 }
  0x3f   : > { %s4743_s4 = sld [smem:[#allocation14_spill]]  ;;  %s492_s28 = scalar_lea.sflag [#allocation3], %s4034_s0 }
  0x40   : > { %s4088_s18 = scalar_lea.hbm %s4740_s12, %s4739_s19  ;;  %s495_s19 = scalar_lea.vmem [#allocation2], %s3503_s16 }
  0x41   : > { %s4742_s13 = scalar_select %p4097_p13, 1, 0 }
  0x42   : > { %s502_s20 = sshll.u32 %s495_s19, 4  ;;  %s4107_s20 = int_to_ptr.vmem [resolvable:$true] %s502_s20 }
  0x45   : > { %s4105_s1 = scalar_lea.hbm %s4743_s4, %s3504_s26  ;;  %s3800_s11 = scalar_lea.hbm %s4743_s4, 6144 }
  0x46   : > { %s3795_s29 = scalar_lea.hbm %s4105_s1, 3072  ;;  %p3801_p3 = scmp.lt.s32.totalorder %s4105_s1, %s4743_s4 }
  0x47   : > { %p3796_p0 = scmp.ne.s32.totalorder %s4105_s1, %s3795_s29  ;;  %p3802_p4 = scmp.lt.s32.totalorder %s3800_s11, %s3795_s29 }
  0x49   : > { %p3798_p1 = pnand %p3796_p0, %p4060_p10  ;;  %p3803_p5 = por %p3802_p4, %p3801_p3 }
  0x4b   : > { %p3799_p2 = pneg %p3798_p1 }
  0x4d   : > { %p3804_p6 = pnand %p3803_p5, %p3799_p2 }
  0x4f   : > { %3807 = shalt.err (!%p3804_p6)
}
  0x50   : > { %s3808_s16 = scalar_lea.vmem %s4107_s20, 3072  ;;  %s3894_s15 = smov [#allocation2]  }
  0x51   : > { %p3809_p9 = scmp.ne.s32.totalorder %s4107_s20, %s3808_s16  ;;  %s3813_s19 = sshll.u32 %s3894_s15, 4  ;;  %s3814_s19 = int_to_ptr.vmem [resolvable:$false] %s3813_s19 }
  0x52   : > { %s3815_s21 = scalar_lea.vmem %s3814_s19, 6144  ;;  %p3816_p12 = scmp.lt.s32.totalorder %s4107_s20, %s3814_s19 }
  0x53   : > { %p3811_p11 = pnand %p3809_p9, %p4060_p10  ;;  %p3817_p0 = scmp.lt.s32.totalorder %s3815_s21, %s3808_s16 }
  0x55   : > { %p3812_p7 = pneg %p3811_p11  ;;  %p3818_p1 = por %p3817_p0, %p3816_p12 }
  0x57   : > { %p3819_p13 = pnand %p3818_p1, %p3812_p7 }
  0x59   : > { %3822 = shalt.err (!%p3819_p13)
}
  0x5a   : > { %s3895_s11 = smov 192   ;;  %s3896_s29 = smov 12  }
  0x5b   : > { %3516 = dma.hbm_to_vmem [thread:$0]  (!%p4036_p8), %s4105_s1, 3072, %s4107_s20, %s492_s28, %s3895_s11, %s3895_s11, %s3896_s29  }
  0x5c   : > { %s3823_s24 = scalar_lea.hbm %s4088_s18, 4096  ;;  %s3828_s16 = scalar_lea.hbm %s4740_s12, 8192 }
  0x5d   : > { %p3824_p2 = scmp.ne.s32.totalorder %s4088_s18, %s3823_s24  ;;  %p3829_p13 = scmp.lt.s32.totalorder %s4088_s18, %s4740_s12 }
  0x5e   : > { %p3830_p5 = scmp.lt.s32.totalorder %s3828_s16, %s3823_s24 }
  0x5f   : > { %p3826_p3 = pnand %p3824_p2, %p4060_p10 }
  0x60   : > { %p3831_p6 = por %p3830_p5, %p3829_p13 }
  0x61   : > { %p3827_p4 = pneg %p3826_p3 }
  0x63   : > { %p3832_p9 = pnand %p3831_p6, %p3827_p4 }
  0x65   : > { %3835 = shalt.err (!%p3832_p9)
}
  0x66   : > { %s3836_s0 = scalar_lea.vmem %s4093_s10, 4096  ;;  %s3897_s1 = smov [#allocation6]  }
  0x67   : > { %p3837_p11 = scmp.ne.s32.totalorder %s4093_s10, %s3836_s0  ;;  %s3841_s20 = sshll.u32 %s3897_s1, 4  ;;  %s3842_s20 = int_to_ptr.vmem [resolvable:$false] %s3841_s20 }
  0x68   : > { %s3843_s28 = scalar_lea.vmem %s3842_s20, 8192  ;;  %p3844_p0 = scmp.lt.s32.totalorder %s4093_s10, %s3842_s20 }
  0x69   : > { %p3839_p7 = pnand %p3837_p11, %p4060_p10  ;;  %p3845_p1 = scmp.lt.s32.totalorder %s3843_s28, %s3836_s0 }
  0x6b   : > { %p3840_p12 = pneg %p3839_p7  ;;  %p3846_p2 = por %p3845_p1, %p3844_p0 }
  0x6d   : > { %p3847_p3 = pnand %p3846_p2, %p3840_p12 }
  0x6f   : > { %3850 = shalt.err (!%p3847_p3)
}
  0x70   : > { %s3898_s21 = smov 64   ;;  %s3899_s11 = smov 4  }
  0x71   : > { %3522 = dma.hbm_to_vmem [thread:$0]  (!%p4036_p8), %s4088_s18, 4096, %s4093_s10, %s4054_s23, %s3898_s21, %s3898_s21, %s3899_s11  }
  0x72   : > { %p4744_p10 = scmp.ne.s32.totalorder %s4742_s13, 0 }
  0x73   : > { %s604_s14 = sand.u32 (!%p4744_p10), 1, %s3881_s22   ;;  %p4745_p4 = scmp.ne.s32.totalorder (!%p4744_p10), %s4735_s30, 0 }
  0x74   : > { %602 = sbr.rel (%p4744_p10) target bundleno = 4323 (0x10e3), region = 84  ;;  %s605_s24 = scalar_lea.sflag (!%p4744_p10), [#allocation3], %s604_s14 }
  0x75   : > { %s3505_s29 = smul.u32 (!%p4744_p10), 192, %s604_s14 }
  0x77   : > { %s4156_s27 = scalar_lea.vmem (!%p4744_p10), [#allocation2], %s3505_s29 }
  0x79   : > { %3868 = dma.done.wait (%p4745_p4), %s605_s24, 3072  }
  0x7a   : > { %3870 = vsyncadd (%p4745_p4), %s605_s24, 4294964224  ;;  %s613_s26 = sand.u32 1, %s4012_s25   ;;  %s3141_s17 = sshll.u32 %s604_s14, 8 }
  0x7b   : > { %s614_s10 = scalar_lea.sflag [#allocation5], %s613_s26  ;;  %s4163_s23 = scalar_lea.vmem [#allocation4], %s3141_s17 }
  0x7c   : > { %3872 = dma.done.wait (%p4745_p4), %s614_s10, 8192  }
  0x7d   : > { %3874 = vsyncadd (%p4745_p4), %s614_s10, 4294959104  ;;  %p711_p8 = scmp.lt.s32.totalorder %s4012_s25, 1  ;;  %s4746_s6 = sld [smem:[#allocation15_spill]] }
  0x7e   : > { %s4748_s24 = sld [smem:[#allocation19_spill]]  ;;  %p3146_p13 = scmp.ne.s32.totalorder %s4012_s25, 0 }
  0x7f   : > { %s4171_s13 = scalar_select %p711_p8, %s4012_s25, 1 }
  0x80   : > { %s4749_s16 = sld [smem:[#allocation12_spill]] (!%p3146_p13) }
  0x81   : > { %s3506_s1 = smul.u32 3, %s4171_s13  ;;  %s3272_s20 = sshll.u32 %s4171_s13, 6 }
  0x82   : > { %s731_s30 = scalar_lea.vmem %s4702_s8, %s4171_s13  ;;  %s734_s4 = scalar_lea.vmem %s4703_s9, %s4171_s13 }
  0x83   : > { %s4186_s11 = scalar_lea.vmem %s4746_s6, %s3272_s20  ;;  %s4195_s18 = scalar_lea.vmem %s4699_s5, %s3506_s1 }
  0x84   : > { %s3145_s28 = sshll.u32 %s4171_s13, 2  ;;  %s4747_s6 = sld [smem:[#allocation17_spill]] }
  0x85   : > { %s741_s26 = scalar_lea.vmem %s4748_s24, %s4171_s13  ;;  %s4215_s1 = scalar_lea.vmem [#allocation6], %s3141_s17 }
  0x86   : > { %746 = sbr.rel (%p3146_p13) target bundleno = 145 (0x91), region = 100 }
  0x8a   : > { %s4209_s12 = scalar_lea.vmem %s4747_s6, %s3145_s28  ;;  %s4750_s28 = sld [smem:[#allocation22_spill]] (!%p3146_p13) }
  0x8b   : > { %v747_v0 = vld [vmem:[%s4749_s16] sm:$0xff]  ;;  %v748_v1 = vld [vmem:[%s4749_s16 + $0x8] sm:$0xff] }
  0x90   : > { %749 = vst [vmem:[%s4750_s28] sm:$0xff] %v747_v0  ;;  %750 = vst [vmem:[%s4750_s28 + $0x8] sm:$0xff] %v748_v1 }
  0x91 PF: > { %s4751_s29 = sld [smem:[#allocation22_spill]]  ;;  %v3585_v4 = vld [vmem:[%s4156_s27 + $0xac] ss:$12 sps:$4 sm:$0xff]   ;;  %v3587_v5 = vld [vmem:[%s4156_s27 + $0xa8] ss:$12 sps:$4 sm:$0xff]   ;;  %v3900_v6 = vmov 0.0   ;;  %s4752_s19 = scalar_lea.vmem %s4696_s2, %s4171_s13  ;;  %v754_v55 = vlaneseq }
  0x92   : > { %3367 = vmatprep.subr.bf16.mxu1 %v3900_v6  ;;  %v3588_v7 = vld [vmem:[%s4156_s27 + $0xb0] ss:$12 sps:$4 sm:$0xff]   ;;  %1016 = vmatprep.subr.bf16.mxu0 %v3585_v4  ;;  %v3589_v16 = vld [vmem:[%s4156_s27 + $0x94] ss:$12 sps:$4 sm:$0xff]   ;;  %v3592_v18 = vld [vmem:[%s4156_s27 + $0x98] ss:$12 sps:$4 sm:$0xff]   ;;  %s4753_s28 = scalar_lea.vmem %s4697_s3, %s4171_s13 }
  0x93   : > { %1017 = vmatpush1.bf16.msra.mxu0 %v3587_v5  ;;  %3368 = vmatpush3.bf16.msra.mxu1 %v3588_v7  ;;  %v3591_v17 = vld [vmem:[%s4156_s27 + $0x90] ss:$12 sps:$4 sm:$0xff]   ;;  %v3595_v20 = vld [vmem:[%s4156_s27 + $0x78] ss:$12 sps:$4 sm:$0xff]   ;;  %v3596_v21 = vld [vmem:[%s4156_s27 + $0x80] ss:$12 sps:$4 sm:$0xff]  }
  0x94   : > { %3369 = vmatprep.subr.bf16.mxu1 %v3900_v6  ;;  %1018 = vmatprep.subr.bf16.mxu0 %v3589_v16  ;;  %v3593_v19 = vld [vmem:[%s4156_s27 + $0x7c] ss:$12 sps:$4 sm:$0xff]   ;;  %v3597_v22 = vld [vmem:[%s4156_s27 + $0x64] ss:$12 sps:$4 sm:$0xff]   ;;  %v3599_v23 = vld [vmem:[%s4156_s27 + $0x60] ss:$12 sps:$4 sm:$0xff]  }
  0x95   : > { %v3600_v24 = vld [vmem:[%s4156_s27 + $0x68] ss:$12 sps:$4 sm:$0xff]   ;;  %v3601_v25 = vld [vmem:[%s4156_s27 + $0x4c] ss:$12 sps:$4 sm:$0xff]   ;;  %v3604_v27 = vld [vmem:[%s4156_s27 + $0x50] ss:$12 sps:$4 sm:$0xff]  }
  0x96   : > { %v3603_v26 = vld [vmem:[%s4156_s27 + $0x48] ss:$12 sps:$4 sm:$0xff]   ;;  %v3901_v29 = vmov 0   ;;  %vm3902_vm0 = vmmov 0   ;;  %v3607_v30 = vld [vmem:[%s4156_s27 + $0x30] ss:$12 sps:$4 sm:$0xff]  }
  0x97   : > { %v751_v2 = vld [vmem:[%s4751_s29] sm:$0xff]  ;;  %v752_v3 = vld [vmem:[%s4751_s29 + $0x8] sm:$0xff]  ;;  %1019 = vmatpush1.bf16.msra.mxu0 %v3591_v17  ;;  %3370 = vmatpush3.bf16.msra.mxu1 %v3592_v18  ;;  %v4297_v56 = vshrl.u32 %v754_v55, 7  ;;  %vm1106_vm1 = vcmask 261120   ;;  %vm1231_vm2 = vcmask 1043456   ;;  %s4754_s14 = sld [smem:[#allocation13_spill]] }
  0x98   : > { %799 = vadd.xlane.f32.xlu0 %v751_v2  ;;  %3371 = vmatprep.subr.bf16.mxu1 %v3900_v6  ;;  %v3605_v28 = vld [vmem:[%s4156_s27 + $0x34] ss:$12 sps:$4 sm:$0xff]   ;;  %v3608_v31 = vld [vmem:[%s4156_s27 + $0x38] ss:$12 sps:$4 sm:$0xff]   ;;  %v3609_v32 = vld [vmem:[%s4156_s27 + $0x1c] ss:$12 sps:$4 sm:$0xff]  }
  0x99   : > { %1020 = vmatprep.subr.bf16.mxu0 %v3593_v19  ;;  %1048 = vmatprep.mubr.bf16.mxu0 %v3901_v29  ;;  %v3611_v33 = vld [vmem:[%s4156_s27 + $0x18] ss:$12 sps:$4 sm:$0xff]   ;;  %v3612_v34 = vld [vmem:[%s4156_s27 + $0x20] ss:$12 sps:$4 sm:$0xff]   ;;  %v3616_v37 = vld [vmem:[%s4156_s27 + $0x8] ss:$12 sps:$4 sm:$0xff]  }
  0x9a   : > { %3383 = vmatprep.mubr.msk.bf16.mxu1 %vm3902_vm0, %v3900_v6  ;;  %v3613_v35 = vld [vmem:[%s4156_s27 + $0x4] ss:$12 sps:$4 sm:$0xff]   ;;  %v3615_v36 = vld [vmem:[%s4156_s27] ss:$12 sps:$4 sm:$0xff]   ;;  %v879_v57 = vsub.s32 1, %v4297_v56  ;;  %v883_v59 = vsub.s32 2, %v4297_v56  ;;  %s4755_s27 = scalar_lea.vmem %s4701_s7, %s4171_s13 }
  0x9b   : > { %1021 = vmatpush1.bf16.msra.mxu0 %v3595_v20  ;;  %3372 = vmatpush3.bf16.msra.mxu1 %v3596_v21  ;;  %v3147_v46 = vld [vmem:[%s4752_s19] ss:$0 sm:$0xff]  ;;  %v4305_v63 = vsub.s32 0, %v4297_v56  ;;  %vm1203_vm5 = vcmask 64512   ;;  %s3905_s17 = smov 96   ;;  %s3906_s24 = smov 64  }
  0x9c   : > { %801 = vadd.xlane.f32.xlu0 %v752_v3  ;;  %3373 = vmatprep.subr.bf16.mxu1 %v3900_v6  ;;  %v3148_v50 = vld [vmem:[%s4753_s28] ss:$0 sm:$0xff]  ;;  %s3907_s15 = smov 32   ;;  %vm2025_vm6 = vcmask 523264   ;;  %vm2028_vm7 = vcmask 785408   ;;  %p3265_p5 = scmp.ne.s32.totalorder %s4012_s25, 1 }
  0x9d   : > { %1022 = vmatprep.subr.bf16.mxu0 %v3597_v22  ;;  %v871_v58 = vld [vmem:[%s4195_s18] sm:$0x7]  ;;  %s4759_s0 = sld [smem:[#allocation22_spill]] (!%p3265_p5) }
  0x9e   : > { %v880_v60 = vrot.slane %v871_v58, %v879_v57  ;;  %v876_v7 = vrot.slane %v871_v58, %v4305_v63 }
  0x9f   : > { %1023 = vmatpush1.bf16.msra.mxu0 %v3599_v23  ;;  %3374 = vmatpush3.bf16.msra.mxu1 %v3600_v24  ;;  %v3903_v23 = vmov 1966171168  }
  0xa0   : > { %1024 = vmatprep.subr.bf16.mxu0 %v3601_v25  ;;  %3375 = vmatprep.subr.bf16.mxu1 %v3900_v6  ;;  %v764_v24 = vunpack.c.l.s4 %v3903_v23  ;;  %v753_v25 = vld [vmem:[%s4754_s14] sm:$0x3] }
  0xa1   : > { %vm760_vm3 = vcmp.gt.f32.partialorder %v753_v25, 0.0 }
  0xa3   : > { %1025 = vmatpush1.bf16.msra.mxu0 %v3603_v26  ;;  %3376 = vmatpush3.bf16.msra.mxu1 %v3604_v27  ;;  %v765_v26 = vunpack.c.0.s8 %v764_v24 }
  0xa4   : > { %1026 = vmatprep.subr.bf16.mxu0 %v3605_v28  ;;  %3377 = vmatprep.subr.bf16.mxu1 %v3900_v6  ;;  %v3904_v28 = vmov -1e+09  }
  0xa5   : > { %v768_v27 = vsub.s32 %v765_v26, %v4297_v56 }
  0xa7   : > { %1027 = vmatpush1.bf16.msra.mxu0 %v3607_v30  ;;  %3378 = vmatpush3.bf16.msra.mxu1 %v3608_v31  ;;  %v761_v30 = vsel %vm760_vm3, 0.0, %v3904_v28 }
  0xa8   : > { %1028 = vmatprep.subr.bf16.mxu0 %v3609_v32  ;;  %3379 = vmatprep.subr.bf16.mxu1 %v3900_v6  ;;  %v769_v31 = vrot.slane %v761_v30, %v768_v27  ;;  %v757_v32 = vand.u32 127, %v754_v55 }
  0xaa   : > { %vm758_vm4 = vcmp.le.s32.totalorder %v757_v32, %v4297_v56 }
  0xab   : > { %1029 = vmatpush1.bf16.msra.mxu0 %v3611_v33  ;;  %3380 = vmatpush3.bf16.msra.mxu1 %v3612_v34  ;;  %v777_v33 = vrot.slane %v769_v31, %v768_v27 }
  0xac   : > { %1030 = vmatprep.subr.bf16.mxu0 %v3613_v35  ;;  %3381 = vmatprep.subr.bf16.mxu1 %v3900_v6  ;;  %v770_v35 = vcombine.high %v769_v31, %v769_v31 }
  0xad   : > { %v788_v34 = vrot.slane %v777_v33, %v4305_v63 }
  0xaf   : > { %1031 = vmatpush1.bf16.msra.mxu0 %v3615_v36  ;;  %3382 = vmatpush3.bf16.msra.mxu1 %v3616_v37  ;;  %v759_v36 = vsel %vm758_vm4, 0.0, %v3904_v28 }
  0xb0   : > { %3387 = vmatprep.subr.bf16.mxu1 %v3900_v6  ;;  %3411 = vmatprep.subr.bf16.mxu0 %v3900_v6  ;;  %v4345_v37 = vadd.f32 %v788_v34, %v759_v36 }
 0x121   : > { %v800_v8 = vpop.xlane.xlu0 %799 }
 0x122   : > { %v804_v9 = vmul.f32 0.0078125, %v800_v8 }
 0x124   : > { %v4241_v10 = vsub.f32 %v751_v2, %v804_v9  ;;  %v884_v2 = vrot.slane %v871_v58, %v883_v59 }
 0x125   : > { %v802_v11 = vpop.xlane.xlu0 %801 }
 0x126   : > { %v805_v12 = vmul.f32 0.0078125, %v802_v11  ;;  %v808_v13 = vmul.f32 %v4241_v10, %v4241_v10 }
 0x128   : > { %v4245_v14 = vsub.f32 %v752_v3, %v805_v12  ;;  %810 = vadd.xlane.f32.xlu1 %v808_v13 }
 0x12a   : > { %v809_v15 = vmul.f32 %v4245_v14, %v4245_v14 }
 0x12c   : > { %812 = vadd.xlane.f32.xlu1 %v809_v15 }
 0x1b1   : > { %v811_v38 = vpop.xlane.xlu1 %810 }
 0x1b2   : > { %v814_v39 = vmul.f32 0.0078125, %v811_v38  ;;  %v784_v38 = vrot.slane %v770_v35, %v768_v27 }
 0x1b4   : > { %v816_v40 = vadd.f32 1e-05, %v814_v39 }
 0x1b5   : > { %v813_v41 = vpop.xlane.xlu1 %812 }
 0x1b6   : > { %3705 = vrsqrt.f32 %v816_v40  ;;  %v815_v42 = vmul.f32 0.0078125, %v813_v41 }
 0x1b8   : > { %v817_v43 = vadd.f32 1e-05, %v815_v42 }
 0x1ba   : > { %3707 = vrsqrt.f32 %v817_v43  ;;  %v792_v43 = vrot.slane %v784_v38, %v4305_v63 }
 0x1c3   : > { %v3706_v44 = vpop.eup %3705 }
 0x1c4   : > { %v820_v45 = vmul.f32 %v3706_v44, %v4241_v10 }
 0x1c6   : > { %v828_v49 = vmul.f32 %v3147_v46, %v820_v45 }
 0x1c7   : > { %v3708_v47 = vpop.eup %3707 }
 0x1c8   : > { %v821_v48 = vmul.f32 %v3708_v47, %v4245_v14  ;;  %v836_v52 = vadd.f32 %v3148_v50, %v828_v49  ;;  %v4350_v47 = vadd.f32 %v792_v43, %v759_v36 }
 0x1ca   : > { %v829_v51 = vmul.f32 %v3147_v46, %v821_v48 }
 0x1cc   : > { %v837_v53 = vadd.f32 %v3148_v50, %v829_v51 }
 0x1ce   : > { %v838_v54 = vpack.c.bf16 %v837_v53, %v836_v52 }
 0x1d0   : > { %1049 = vmatmul.mubr.bf16.vlgmr.msra.gmra.mxu0 %v838_v54  ;;  %3384 = vmatmul.mubr.bf16.vlgmr.msra.gmra.mxu1 %v838_v54 }
 0x1d1   : > { %3389 = vmatprep.mubr.msk.bf16.mxu1 %vm3902_vm0, %v3900_v6  ;;  %3413 = vmatprep.mubr.msk.bf16.mxu0 %vm3902_vm0, %v3900_v6 }
 0x290   : > { %v1050_v61 = vpop.f32.mrf.mxu0  ;;  %v1093_v62 = vpop.f32.mrf.mxu1 }
 0x291   : > { %v1051_v14 = vadd.f32 %v1050_v61, %v876_v7  ;;  %v1094_v17 = vadd.f32 %v1093_v62, %v884_v2 }
 0x292   : > { %v1052_v0 = vpop.f32.mrf.mxu0  ;;  %v3385_v1 = vpop.f32.mrf.mxu1 }
 0x293   : > { %v1053_v3 = vadd.f32 %v1052_v0, %v880_v60  ;;  %v4319_v16 = vpack.c.bf16 %v1051_v14, %v1051_v14  ;;  %v4328_v20 = vpack.c.bf16 %v1094_v17, %v1094_v17 }
 0x294   : > { %v1054_v4 = vpop.f32.mrf.mxu0  ;;  %v1096_v5 = vpop.f32.mrf.mxu1 }
 0x295   : > { %v4310_v8 = vpack.c.bf16 %v1053_v3, %v1053_v3  ;;  %v4312_v9 = vadd.f32 %v1096_v5, %v884_v2  ;;  %v1055_v19 = vadd.f32 %v1054_v4, %v876_v7  ;;  %v1233_v22 = vsel %vm1231_vm2, %v4328_v20, 0 }
 0x296   : > { %v1056_v10 = vpop.f32.mrf.mxu0  ;;  %v3386_v11 = vpop.f32.mrf.mxu1 }
 0x297   : > { %v1057_v12 = vadd.f32 %v1056_v10, %v880_v60  ;;  %v1111_v13 = vsel %vm1106_vm1, %v4310_v8, 0  ;;  %v4330_v21 = vpack.c.bf16 %v1055_v19, %v1055_v19  ;;  %v4371_v17 = vpack.c.bf16 %v4312_v9, %v4312_v9 }
 0x298   : > { %3388 = vmatpush3.bf16.xpose.msra.mxu1 %v1111_v13 }
 0x299   : > { %3393 = vmatprep.subr.bf16.mxu1 %v3900_v6  ;;  %v4317_v15 = vpack.c.bf16 %v1057_v12, %v1057_v12 }
 0x29b   : > { %v1157_v18 = vsel %vm1106_vm1, %v4317_v15, 0 }
 0x29f   : > { %3390 = vmatmul.mubr.msk.bf16.vlgmr.msra.gmra.mxu1 %vm1106_vm1, %v4319_v16 }
 0x2a0   : > { %3394 = vmatpush3.bf16.xpose.msra.mxu1 %v1157_v18  ;;  %3395 = vmatprep.mubr.msk.bf16.mxu1 %vm3902_vm0, %v3900_v6 }
 0x2a1   : > { %3399 = vmatprep.subr.bf16.mxu1 %v3900_v6 }
 0x2a7   : > { %3396 = vmatmul.mubr.msk.bf16.vlgmr.msra.gmra.mxu1 %vm1106_vm1, %v4330_v21 }
 0x2a8   : > { %3400 = vmatpush3.bf16.msra.mxu1 %v1233_v22  ;;  %3401 = vmatprep.mubr.msk.bf16.mxu1 %vm3902_vm0, %v3900_v6  ;;  %v1279_v22 = vsel %vm1231_vm2, %v4371_v17, 0 }
 0x2a9   : > { %3405 = vmatprep.subr.bf16.mxu1 %v3900_v6 }
 0x35f   : > { %v1147_v39 = vpop.f32.mrf.mxu1 }
 0x360   : > { %v1199_v40 = vmul.f32 0.17677669, %v1147_v39 }
 0x361   : > { %v3391_v41 = vpop.f32.mrf.mxu1 }
 0x362   : > { %v1201_v42 = vadd.f32 %v1199_v40, %v4345_v37 }
 0x363   : > { %v1150_v44 = vpop.f32.mrf.mxu1 }
 0x364   : > { %v1204_v45 = vsel %vm1203_vm5, %v1201_v42, -inf }
 0x365   : > { %1205 = vmax.xlane.f32.xlu0 %v1204_v45  ;;  %v3392_v46 = vpop.f32.mrf.mxu1 }
 0x367   : > { %v1193_v48 = vpop.f32.mrf.mxu1 }
 0x368   : > { %v1200_v49 = vmul.f32 0.17677669, %v1193_v48 }
 0x369   : > { %v3397_v50 = vpop.f32.mrf.mxu1 }
 0x36a   : > { %v1202_v51 = vadd.f32 %v1200_v49, %v4350_v47 }
 0x36b   : > { %v1196_v52 = vpop.f32.mrf.mxu1 }
 0x36c   : > { %v1207_v53 = vsel %vm1203_vm5, %v1202_v51, -inf }
 0x36d   : > { %1208 = vmax.xlane.f32.xlu1 %v1207_v53  ;;  %v3398_v54 = vpop.f32.mrf.mxu1 }
 0x37e   : > { %1377 = vrot.lane.b32.xlu1 %v4317_v15, %s3905_s17 }
 0x3ee   : > { %v1206_v55 = vpop.xlane.xlu0 %1205 }
 0x3ef   : > { %v1210_v58 = vsub.f32 %v1201_v42, %v1206_v55 }
 0x3f1   : > { %v1212_v60 = vmul.f32 1.442695, %v1210_v58 }
 0x3f3   : > { %3709 = vpow2.f32 %v1212_v60 }
 0x3f6   : > { %v1209_v61 = vpop.xlane.xlu1 %1208 }
 0x3f7   : > { %v1211_v62 = vsub.f32 %v1202_v51, %v1209_v61 }
 0x3f9   : > { %v1214_v0 = vmul.f32 1.442695, %v1211_v62 }
 0x3fa   : > { %v1378_v7 = vpop.permute.xlu1 %1377 }
 0x3fb   : > { %3711 = vpow2.f32 %v1214_v0  ;;  %v1383_v26 = vsel %vm1106_vm1, %v1378_v7, 0 }
 0x400   : > { %v3710_v1 = vpop.eup %3709 }
 0x401   : > { %v1216_v2 = vsel %vm1203_vm5, %v3710_v1, 0.0 }
 0x402   : > { %1217 = vadd.xlane.f32.xlu0 %v1216_v2 }
 0x408   : > { %v3712_v3 = vpop.eup %3711 }
 0x409   : > { %v1219_v4 = vsel %vm1203_vm5, %v3712_v3, 0.0 }
 0x40a   : > { %1220 = vadd.xlane.f32.xlu1 %v1219_v4 }
 0x418   : > { %1325 = vrot.lane.b32.xlu0 %v4310_v8, %s3905_s17 }
 0x41b   : > { %1322 = vrot.lane.b32.xlu1 %v4319_v16, %s3905_s17 }
 0x41f   : > { %1374 = vrot.lane.b32.xlu1 %v4330_v21, %s3905_s17 }
 0x48b   : > { %v1218_v5 = vpop.xlane.xlu0 %1217 }
 0x48c   : > { %3713 = vrcp.f32 %v1218_v5 }
 0x48f   : > { %v1326_v10 = vpop.permute.xlu0 %1325 }
 0x490   : > { %v1331_v11 = vsel %vm1106_vm1, %v1326_v10, 0 }
 0x491   : > { %3412 = vmatpush3.bf16.xpose.msra.mxu0 %v1331_v11 }
 0x492   : > { %3423 = vmatprep.subr.bf16.mxu0 %v3900_v6 }
 0x493   : > { %v1221_v12 = vpop.xlane.xlu1 %1220 }
 0x494   : > { %3715 = vrcp.f32 %v1221_v12 }
 0x497   : > { %v1323_v13 = vpop.permute.xlu1 %1322 }
 0x498   : > { %3414 = vmatmul.mubr.msk.bf16.vlgmr.msra.gmra.mxu0 %vm1106_vm1, %v1323_v13 }
 0x499   : > { %v3714_v14 = vpop.eup %3713  ;;  %3425 = vmatprep.mubr.msk.bf16.mxu0 %vm3902_vm0, %v3900_v6 }
 0x49a   : > { %v1224_v18 = vmul.f32 %v3714_v14, %v3710_v1 }
 0x49b   : > { %v1375_v9 = vpop.permute.xlu1 %1374 }
 0x49c   : > { %v1226_v19 = vpack.c.bf16 %v1224_v18, %v1224_v18 }
 0x49e   : > { %3402 = vmatmul.mubr.msk.bf16.vlgmr.msra.gmra.mxu1 %vm1203_vm5, %v1226_v19 }
 0x49f   : > { %3406 = vmatpush3.bf16.msra.mxu1 %v1279_v22  ;;  %3407 = vmatprep.mubr.msk.bf16.mxu1 %vm3902_vm0, %v3900_v6 }
 0x4a0   : > { %3417 = vmatprep.subr.bf16.mxu1 %v3900_v6 }
 0x4a1   : > { %v3716_v23 = vpop.eup %3715 }
 0x4a2   : > { %v1225_v24 = vmul.f32 %v3716_v23, %v3712_v3 }
 0x4a4   : > { %v1227_v25 = vpack.c.bf16 %v1225_v24, %v1225_v24 }
 0x4a6   : > { %3408 = vmatmul.mubr.msk.bf16.vlgmr.msra.gmra.mxu1 %vm1203_vm5, %v1227_v25 }
 0x4a7   : > { %3418 = vmatpush3.bf16.xpose.msra.mxu1 %v1383_v26  ;;  %3419 = vmatprep.mubr.msk.bf16.mxu1 %vm3902_vm0, %v3900_v6 }
 0x4a8   : > { %3429 = vmatprep.subr.bf16.mxu1 %v3900_v6 }
 0x4ae   : > { %3420 = vmatmul.mubr.msk.bf16.vlgmr.msra.gmra.mxu1 %vm1106_vm1, %v1375_v9 }
 0x4af   : > { %3431 = vmatprep.mubr.msk.bf16.mxu1 %vm3902_vm0, %v3900_v6 }
 0x558   : > { %v1367_v27 = vpop.f32.mrf.mxu0 }
 0x559   : > { %v1425_v28 = vmul.f32 0.17677669, %v1367_v27 }
 0x55a   : > { %v3415_v30 = vpop.f32.mrf.mxu0 }
 0x55b   : > { %v1427_v31 = vadd.f32 %v1425_v28, %v4345_v37 }
 0x55c   : > { %v1370_v32 = vpop.f32.mrf.mxu0 }
 0x55d   : > { %v1429_v33 = vsel %vm1203_vm5, %v1427_v31, -inf }
 0x55e   : > { %1430 = vmax.xlane.f32.xlu0 %v1429_v33  ;;  %v4389_v34 = vpop.f32.mrf.mxu1  ;;  %v3416_v35 = vpop.f32.mrf.mxu0 }
 0x560   : > { %v3403_v36 = vpop.f32.mrf.mxu1 }
 0x562   : > { %v1272_v38 = vpop.f32.mrf.mxu1 }
 0x564   : > { %v3404_v39 = vpop.f32.mrf.mxu1 }
 0x566   : > { %v4391_v40 = vpop.f32.mrf.mxu1 }
 0x568   : > { %v3409_v41 = vpop.f32.mrf.mxu1 }
 0x56a   : > { %v1318_v42 = vpop.f32.mrf.mxu1 }
 0x56c   : > { %v3410_v43 = vpop.f32.mrf.mxu1 }
 0x56e   : > { %v1419_v44 = vpop.f32.mrf.mxu1 }
 0x56f   : > { %v1426_v45 = vmul.f32 0.17677669, %v1419_v44 }
 0x570   : > { %v3421_v46 = vpop.f32.mrf.mxu1 }
 0x571   : > { %v1428_v48 = vadd.f32 %v1426_v45, %v4350_v47 }
 0x572   : > { %v1422_v49 = vpop.f32.mrf.mxu1 }
 0x573   : > { %v1432_v50 = vsel %vm1203_vm5, %v1428_v48, -inf }
 0x574   : > { %1433 = vmax.xlane.f32.xlu1 %v1432_v50  ;;  %v3422_v51 = vpop.f32.mrf.mxu1 }
 0x585   : > { %1503 = vrot.lane.b32.xlu1 %v4371_v17, %s3905_s17 }
 0x589   : > { %1553 = vrot.lane.b32.xlu1 %v4310_v8, %s3906_s24 }
 0x58d   : > { %1603 = vrot.lane.b32.xlu1 %v4317_v15, %s3906_s24 }
 0x591   : > { %1601 = vrot.lane.b32.xlu1 %v4330_v21, %s3906_s24 }
 0x5e7   : > { %v1431_v52 = vpop.xlane.xlu0 %1430 }
 0x5e8   : > { %v1435_v53 = vsub.f32 %v1427_v31, %v1431_v52 }
 0x5ea   : > { %v1437_v54 = vmul.f32 1.442695, %v1435_v53 }
 0x5ec   : > { %3717 = vpow2.f32 %v1437_v54 }
 0x5f9   : > { %v3718_v55 = vpop.eup %3717 }
 0x5fa   : > { %v1441_v58 = vsel %vm1203_vm5, %v3718_v55, 0.0 }
 0x5fb   : > { %1442 = vadd.xlane.f32.xlu0 %v1441_v58 }
 0x5fd   : > { %v1434_v60 = vpop.xlane.xlu1 %1433 }
 0x5fe   : > { %v1436_v61 = vsub.f32 %v1428_v48, %v1434_v60 }
 0x600   : > { %v1439_v62 = vmul.f32 1.442695, %v1436_v61 }
 0x601   : > { %v1504_v0 = vpop.permute.xlu1 %1503 }
 0x602   : > { %3719 = vpow2.f32 %v1439_v62  ;;  %v1509_v1 = vsel %vm1231_vm2, %v1504_v0, 0 }
 0x603   : > { %3430 = vmatpush3.bf16.msra.mxu1 %v1509_v1 }
 0x604   : > { %3441 = vmatprep.subr.bf16.mxu1 %v3900_v6 }
 0x605   : > { %v1554_v13 = vpop.permute.xlu1 %1553 }
 0x606   : > { %v1559_v18 = vsel %vm1106_vm1, %v1554_v13, 0 }
 0x609   : > { %v1604_v23 = vpop.permute.xlu1 %1603 }
 0x60a   : > { %v1609_v26 = vsel %vm1106_vm1, %v1604_v23, 0 }
 0x60d   : > { %v1602_v9 = vpop.permute.xlu1 %1601 }
 0x60f   : > { %v3720_v2 = vpop.eup %3719 }
 0x610   : > { %v1444_v3 = vsel %vm1203_vm5, %v3720_v2, 0.0 }
 0x611   : > { %1445 = vadd.xlane.f32.xlu0 %v1444_v3 }
 0x627   : > { %1454 = vrot.lane.b32.xlu0 %v4328_v20, %s3905_s17 }
 0x62b   : > { %1551 = vrot.lane.b32.xlu0 %v4319_v16, %s3906_s24 }
 0x684   : > { %v1443_v4 = vpop.xlane.xlu0 %1442 }
 0x685   : > { %3721 = vrcp.f32 %v1443_v4 }
 0x692   : > { %v3722_v5 = vpop.eup %3721 }
 0x693   : > { %v1449_v10 = vmul.f32 %v3722_v5, %v3718_v55 }
 0x695   : > { %v1451_v14 = vpack.c.bf16 %v1449_v10, %v1449_v10 }
 0x69a   : > { %v1446_v7 = vpop.xlane.xlu0 %1445 }
 0x69b   : > { %3723 = vrcp.f32 %v1446_v7 }
 0x69e   : > { %v1455_v11 = vpop.permute.xlu0 %1454 }
 0x69f   : > { %v1460_v12 = vsel %vm1231_vm2, %v1455_v11, 0 }
 0x6a0   : > { %3424 = vmatpush3.bf16.msra.mxu0 %v1460_v12 }
 0x6a1   : > { %3435 = vmatprep.subr.bf16.mxu0 %v3900_v6 }
 0x6a2   : > { %v1552_v24 = vpop.permute.xlu0 %1551 }
 0x6a3   : > { %3426 = vmatmul.mubr.msk.bf16.vlgmr.msra.gmra.mxu0 %vm1203_vm5, %v1451_v14 }
 0x6a4   : > { %3436 = vmatpush3.bf16.xpose.msra.mxu0 %v1559_v18  ;;  %3437 = vmatprep.mubr.msk.bf16.mxu0 %vm3902_vm0, %v3900_v6 }
 0x6a5   : > { %3447 = vmatprep.subr.bf16.mxu0 %v3900_v6 }
 0x6a8   : > { %v3724_v19 = vpop.eup %3723 }
 0x6a9   : > { %v1450_v22 = vmul.f32 %v3724_v19, %v3720_v2 }
 0x6ab   : > { %3438 = vmatmul.mubr.msk.bf16.vlgmr.msra.gmra.mxu0 %vm1106_vm1, %v1552_v24  ;;  %v1452_v25 = vpack.c.bf16 %v1450_v22, %v1450_v22 }
 0x6ac   : > { %3449 = vmatprep.mubr.msk.bf16.mxu0 %vm3902_vm0, %v3900_v6 }
 0x6ad   : > { %3432 = vmatmul.mubr.msk.bf16.vlgmr.msra.gmra.mxu1 %vm1203_vm5, %v1452_v25 }
 0x6ae   : > { %3442 = vmatpush3.bf16.xpose.msra.mxu1 %v1609_v26  ;;  %3443 = vmatprep.mubr.msk.bf16.mxu1 %vm3902_vm0, %v3900_v6 }
 0x6af   : > { %3453 = vmatprep.subr.bf16.mxu1 %v3900_v6 }
 0x6b5   : > { %3444 = vmatmul.mubr.msk.bf16.vlgmr.msra.gmra.mxu1 %vm1106_vm1, %v1602_v9 }
 0x6b6   : > { %3455 = vmatprep.mubr.msk.bf16.mxu1 %vm3902_vm0, %v3900_v6 }
 0x763   : > { %v4429_v27 = vpop.f32.mrf.mxu0 }
 0x765   : > { %v3427_v28 = vpop.f32.mrf.mxu0 }
 0x767   : > { %v1499_v30 = vpop.f32.mrf.mxu0 }
 0x769   : > { %v3428_v31 = vpop.f32.mrf.mxu0 }
 0x76b   : > { %v1595_v32 = vpop.f32.mrf.mxu0 }
 0x76c   : > { %v1651_v33 = vmul.f32 0.17677669, %v1595_v32 }
 0x76d   : > { %v4431_v35 = vpop.f32.mrf.mxu1  ;;  %v3439_v36 = vpop.f32.mrf.mxu0 }
 0x76e   : > { %v3570_v38 = vpack.i.bf16 %v4431_v35, %v4429_v27  ;;  %v1653_v39 = vadd.f32 %v1651_v33, %v4345_v37 }
 0x76f   : > { %v3433_v41 = vpop.f32.mrf.mxu1  ;;  %v1598_v42 = vpop.f32.mrf.mxu0 }
 0x770   : > { %v1655_v43 = vsel %vm1203_vm5, %v1653_v39, -inf }
 0x771   : > { %1656 = vmax.xlane.f32.xlu0 %v1655_v43  ;;  %v1548_v44 = vpop.f32.mrf.mxu1  ;;  %v3440_v45 = vpop.f32.mrf.mxu0 }
 0x773   : > { %v3434_v46 = vpop.f32.mrf.mxu1 }
 0x775   : > { %v1645_v48 = vpop.f32.mrf.mxu1 }
 0x776   : > { %v1652_v49 = vmul.f32 0.17677669, %v1645_v48 }
 0x777   : > { %v3445_v50 = vpop.f32.mrf.mxu1 }
 0x778   : > { %v1654_v51 = vadd.f32 %v1652_v49, %v4350_v47 }
 0x779   : > { %v1648_v52 = vpop.f32.mrf.mxu1 }
 0x77a   : > { %v1658_v53 = vsel %vm1203_vm5, %v1654_v51, -inf }
 0x77b   : > { %1659 = vmax.xlane.f32.xlu1 %v1658_v53  ;;  %v3446_v54 = vpop.f32.mrf.mxu1 }
 0x78c   : > { %1727 = vrot.lane.b32.xlu1 %v4371_v17, %s3906_s24 }
 0x790   : > { %1777 = vrot.lane.b32.xlu1 %v4310_v8, %s3907_s15 }
 0x794   : > { %1827 = vrot.lane.b32.xlu1 %v4317_v15, %s3907_s15 }
 0x798   : > { %1825 = vrot.lane.b32.xlu1 %v4330_v21, %s3907_s15 }
 0x7fa   : > { %v1657_v55 = vpop.xlane.xlu0 %1656 }
 0x7fb   : > { %v1661_v58 = vsub.f32 %v1653_v39, %v1657_v55 }
 0x7fd   : > { %v1663_v60 = vmul.f32 1.442695, %v1661_v58 }
 0x7ff   : > { %3725 = vpow2.f32 %v1663_v60 }
 0x804   : > { %v1660_v61 = vpop.xlane.xlu1 %1659 }
 0x805   : > { %v1662_v62 = vsub.f32 %v1654_v51, %v1660_v61 }
 0x807   : > { %v1665_v0 = vmul.f32 1.442695, %v1662_v62 }
 0x808   : > { %v1728_v1 = vpop.permute.xlu1 %1727 }
 0x809   : > { %3727 = vpow2.f32 %v1665_v0  ;;  %v1733_v2 = vsel %vm1231_vm2, %v1728_v1, 0 }
 0x80a   : > { %3454 = vmatpush3.bf16.msra.mxu1 %v1733_v2 }
 0x80b   : > { %3465 = vmatprep.subr.bf16.mxu1 %v3900_v6 }
 0x80c   : > { %v3726_v8 = vpop.eup %3725  ;;  %v1778_v13 = vpop.permute.xlu1 %1777 }
 0x80d   : > { %v1667_v15 = vsel %vm1203_vm5, %v3726_v8, 0.0  ;;  %v1783_v18 = vsel %vm1106_vm1, %v1778_v13, 0  ;;  %v3618_v13 = vld [vmem:[%s4186_s11 + $0x30] sm:$0xff]  }
 0x80e   : > { %1668 = vadd.xlane.f32.xlu0 %v1667_v15 }
 0x810   : > { %v1828_v22 = vpop.permute.xlu1 %1827 }
 0x811   : > { %v1833_v25 = vsel %vm1106_vm1, %v1828_v22, 0  ;;  %v3623_v22 = vld [vmem:[%s4186_s11 + $0x8] sm:$0xff]  }
 0x814   : > { %v1826_v26 = vpop.permute.xlu1 %1825 }
 0x816   : > { %v3728_v3 = vpop.eup %3727 }
 0x817   : > { %v1670_v21 = vsel %vm1203_vm5, %v3728_v3, 0.0 }
 0x818   : > { %1671 = vadd.xlane.f32.xlu0 %v1670_v21 }
 0x82e   : > { %1679 = vrot.lane.b32.xlu0 %v4328_v20, %s3906_s24 }
 0x832   : > { %1775 = vrot.lane.b32.xlu0 %v4319_v16, %s3907_s15 }
 0x897   : > { %v1669_v4 = vpop.xlane.xlu0 %1668 }
 0x898   : > { %3729 = vrcp.f32 %v1669_v4 }
 0x8a1   : > { %v1672_v5 = vpop.xlane.xlu0 %1671 }
 0x8a2   : > { %3731 = vrcp.f32 %v1672_v5 }
 0x8a5   : > { %v3730_v7 = vpop.eup %3729  ;;  %v1680_v10 = vpop.permute.xlu0 %1679 }
 0x8a6   : > { %v1685_v11 = vsel %vm1231_vm2, %v1680_v10, 0  ;;  %v1675_v12 = vmul.f32 %v3730_v7, %v3726_v8 }
 0x8a7   : > { %3448 = vmatpush3.bf16.msra.mxu0 %v1685_v11 }
 0x8a8   : > { %v1677_v14 = vpack.c.bf16 %v1675_v12, %v1675_v12  ;;  %3459 = vmatprep.subr.bf16.mxu0 %v3900_v6  ;;  %v3617_v12 = vld [vmem:[%s4186_s11 + $0x38] sm:$0xff]  }
 0x8a9   : > { %v1776_v23 = vpop.permute.xlu0 %1775 }
 0x8aa   : > { %3450 = vmatmul.mubr.msk.bf16.vlgmr.msra.gmra.mxu0 %vm1203_vm5, %v1677_v14  ;;  %v3619_v14 = vld [vmem:[%s4186_s11 + $0x28] sm:$0xff]  }
 0x8ab   : > { %3460 = vmatpush3.bf16.xpose.msra.mxu0 %v1783_v18  ;;  %3461 = vmatprep.mubr.msk.bf16.mxu0 %vm3902_vm0, %v3900_v6  ;;  %v3620_v18 = vld [vmem:[%s4186_s11 + $0x20] sm:$0xff]  }
 0x8ac   : > { %3471 = vmatprep.subr.bf16.mxu0 %v3900_v6 }
 0x8af   : > { %v3732_v16 = vpop.eup %3731 }
 0x8b0   : > { %v1676_v19 = vmul.f32 %v3732_v16, %v3728_v3  ;;  %v3621_v16 = vld [vmem:[%s4186_s11 + $0x18] sm:$0xff]  }
 0x8b2   : > { %3462 = vmatmul.mubr.msk.bf16.vlgmr.msra.gmra.mxu0 %vm1106_vm1, %v1776_v23  ;;  %v1678_v24 = vpack.c.bf16 %v1676_v19, %v1676_v19  ;;  %v3622_v19 = vld [vmem:[%s4186_s11 + $0x10] sm:$0xff]  }
 0x8b3   : > { %3473 = vmatprep.mubr.msk.bf16.mxu0 %vm3902_vm0, %v3900_v6 }
 0x8b4   : > { %3456 = vmatmul.mubr.msk.bf16.vlgmr.msra.gmra.mxu1 %vm1203_vm5, %v1678_v24  ;;  %v3624_v24 = vld [vmem:[%s4186_s11] sm:$0xff]   ;;  %s4758_s11 = sld [smem:[#allocation21_spill]] (!%p3265_p5) }
 0x8b5   : > { %3466 = vmatpush3.bf16.xpose.msra.mxu1 %v1833_v25  ;;  %3467 = vmatprep.mubr.msk.bf16.mxu1 %vm3902_vm0, %v3900_v6 }
 0x8b6   : > { %3477 = vmatprep.subr.bf16.mxu1 %v3900_v6 }
 0x8bc   : > { %3468 = vmatmul.mubr.msk.bf16.vlgmr.msra.gmra.mxu1 %vm1106_vm1, %v1826_v26 }
 0x8bd   : > { %3479 = vmatprep.mubr.msk.bf16.mxu1 %vm3902_vm0, %v3900_v6 }
 0x96a   : > { %v1721_v9 = vpop.f32.mrf.mxu0 }
 0x96c   : > { %v3451_v28 = vpop.f32.mrf.mxu0 }
 0x96e   : > { %v1724_v30 = vpop.f32.mrf.mxu0 }
 0x970   : > { %v3452_v31 = vpop.f32.mrf.mxu0 }
 0x972   : > { %v1819_v32 = vpop.f32.mrf.mxu0 }
 0x973   : > { %v1875_v33 = vmul.f32 0.17677669, %v1819_v32 }
 0x974   : > { %v1769_v36 = vpop.f32.mrf.mxu1  ;;  %v3463_v39 = vpop.f32.mrf.mxu0 }
 0x975   : > { %v1877_v41 = vadd.f32 %v1875_v33, %v4345_v37  ;;  %v3575_v37 = vpack.i.bf16 %v1769_v36, %v1721_v9 }
 0x976   : > { %v3457_v42 = vpop.f32.mrf.mxu1  ;;  %v1822_v43 = vpop.f32.mrf.mxu0 }
 0x977   : > { %v1879_v44 = vsel %vm1203_vm5, %v1877_v41, -inf }
 0x978   : > { %1880 = vmax.xlane.f32.xlu0 %v1879_v44  ;;  %v1772_v45 = vpop.f32.mrf.mxu1  ;;  %v3464_v46 = vpop.f32.mrf.mxu0 }
 0x97a   : > { %v3458_v48 = vpop.f32.mrf.mxu1 }
 0x97c   : > { %v1869_v49 = vpop.f32.mrf.mxu1 }
 0x97d   : > { %v1876_v50 = vmul.f32 0.17677669, %v1869_v49 }
 0x97e   : > { %v3469_v51 = vpop.f32.mrf.mxu1 }
 0x97f   : > { %v1878_v52 = vadd.f32 %v1876_v50, %v4350_v47 }
 0x980   : > { %v1872_v53 = vpop.f32.mrf.mxu1 }
 0x981   : > { %v1882_v54 = vsel %vm1203_vm5, %v1878_v52, -inf }
 0x982   : > { %1883 = vmax.xlane.f32.xlu1 %v1882_v54  ;;  %v3470_v55 = vpop.f32.mrf.mxu1 }
 0x993   : > { %1951 = vrot.lane.b32.xlu1 %v4371_v17, %s3907_s15 }
 0x997   : > { %3571 = vrot.lane.b32.xlu1 %v3570_v38, %s3907_s15 }
 0x99b   : > { %3576 = vrot.lane.b32.xlu1 %v3575_v37, %s3906_s24 }
 0xa01   : > { %v1881_v58 = vpop.xlane.xlu0 %1880 }
 0xa02   : > { %v1885_v60 = vsub.f32 %v1877_v41, %v1881_v58  ;;  %v3761_v58 = vld [vmem:[%s4751_s29] sm:$0xff] }
 0xa04   : > { %v1887_v61 = vmul.f32 1.442695, %v1885_v60 }
 0xa06   : > { %3733 = vpow2.f32 %v1887_v61 }
 0xa0b   : > { %v1884_v47 = vpop.xlane.xlu1 %1883 }
 0xa0c   : > { %v1886_v62 = vsub.f32 %v1878_v52, %v1884_v47 }
 0xa0e   : > { %v1889_v0 = vmul.f32 1.442695, %v1886_v62  ;;  %v3762_v62 = vld [vmem:[%s4751_s29 + $0x8] sm:$0xff] }
 0xa0f   : > { %v1952_v1 = vpop.permute.xlu1 %1951 }
 0xa10   : > { %3735 = vpow2.f32 %v1889_v0  ;;  %v1957_v2 = vsel %vm1231_vm2, %v1952_v1, 0  ;;  %v3625_v1 = vld [vmem:[%s4163_s23 + $0xe0] ss:$16 sps:$4 sm:$0xff]  }
 0xa11   : > { %3478 = vmatpush3.bf16.msra.mxu1 %v1957_v2  ;;  %v3627_v2 = vld [vmem:[%s4163_s23 + $0xe4] ss:$16 sps:$4 sm:$0xff]  }
 0xa12   : > { %2401 = vmatprep.subr.bf16.mxu1 %v3627_v2  ;;  %v3675_v2 = vld [vmem:[%s4215_s1 + $0x38] sm:$0xff]  }
 0xa13   : > { %v3734_v17 = vpop.eup %3733  ;;  %v3572_v36 = vpop.permute.xlu1 %3571 }
 0xa14   : > { %v1891_v8 = vsel %vm1203_vm5, %v3734_v17, 0.0  ;;  %v3574_v41 = vunpack.i.h.bf16 %v3572_v36  ;;  %v3573_v42 = vunpack.i.l.bf16 %v3572_v36  ;;  %v3666_v36 = vld [vmem:[%s4163_s23 + $0x2c] ss:$16 sps:$4 sm:$0xff]  }
 0xa15   : > { %1892 = vadd.xlane.f32.xlu0 %v1891_v8  ;;  %v3630_v8 = vld [vmem:[%s4163_s23 + $0xec] ss:$16 sps:$4 sm:$0xff]  }
 0xa16   : > { %v2024_v45 = vsel %vm1106_vm1, %v4391_v40, %v3574_v41  ;;  %v2023_v46 = vsel %vm1106_vm1, %v4389_v34, %v3573_v42  ;;  %v3189_v40 = vld [vmem:[%s4755_s27] ss:$0 sm:$0xff]  ;;  %v3664_v41 = vld [vmem:[%s4163_s23 + $0x28] ss:$16 sps:$4 sm:$0xff]   ;;  %v3669_v42 = vld [vmem:[%s4163_s23 + $0x4] ss:$16 sps:$4 sm:$0xff]  }
 0xa17   : > { %v3577_v39 = vpop.permute.xlu1 %3576 }
 0xa18   : > { %v3579_v43 = vunpack.i.h.bf16 %v3577_v39 }
 0xa1a   : > { %v2027_v51 = vsel %vm2025_vm6, %v2024_v45, %v3579_v43  ;;  %v3672_v43 = vld [vmem:[%s4163_s23 + $0xc] ss:$16 sps:$4 sm:$0xff]  }
 0xa1d   : > { %v3736_v27 = vpop.eup %3735 }
 0xa1e   : > { %v1894_v35 = vsel %vm1203_vm5, %v3736_v27, 0.0 }
 0xa1f   : > { %1895 = vadd.xlane.f32.xlu0 %v1894_v35 }
 0xa35   : > { %1903 = vrot.lane.b32.xlu0 %v4328_v20, %s3907_s15 }
 0xa9e   : > { %v1893_v38 = vpop.xlane.xlu0 %1892 }
 0xa9f   : > { %3737 = vrcp.f32 %v1893_v38 }
 0xaa8   : > { %v1896_v15 = vpop.xlane.xlu0 %1895 }
 0xaa9   : > { %3739 = vrcp.f32 %v1896_v15 }
 0xaac   : > { %v3738_v3 = vpop.eup %3737  ;;  %v1904_v21 = vpop.permute.xlu0 %1903 }
 0xaad   : > { %v1909_v4 = vsel %vm1231_vm2, %v1904_v21, 0  ;;  %v1899_v5 = vmul.f32 %v3738_v3, %v3734_v17  ;;  %v3628_v17 = vld [vmem:[%s4163_s23 + $0xe8] ss:$16 sps:$4 sm:$0xff]  }
 0xaae   : > { %3472 = vmatpush3.bf16.msra.mxu0 %v1909_v4 }
 0xaaf   : > { %v1901_v7 = vpack.c.bf16 %v1899_v5, %v1899_v5  ;;  %3483 = vmatprep.subr.bf16.mxu0 %v3900_v6 }
 0xab1   : > { %3474 = vmatmul.mubr.msk.bf16.vlgmr.msra.gmra.mxu0 %vm1203_vm5, %v1901_v7  ;;  %v3633_v7 = vld [vmem:[%s4163_s23 + $0xc4] ss:$16 sps:$4 sm:$0xff]  }
 0xab2   : > { %3499 = vmatprep.mubr.msk.bf16.mxu0 %vm3902_vm0, %v3900_v6  ;;  %3484 = vmatpush3.bf16.msra.mxu0 %v3617_v12  ;;  %v3639_v12 = vld [vmem:[%s4163_s23 + $0xa4] ss:$16 sps:$4 sm:$0xff]  }
 0xab3   : > { %3485 = vmatprep.subr.bf16.mxu0 %v3900_v6 }
 0xab6   : > { %v3740_v20 = vpop.eup %3739  ;;  %3486 = vmatpush3.bf16.msra.mxu0 %v3618_v13  ;;  %v3642_v13 = vld [vmem:[%s4163_s23 + $0xac] ss:$16 sps:$4 sm:$0xff]  }
 0xab7   : > { %v1900_v10 = vmul.f32 %v3740_v20, %v3736_v27  ;;  %3487 = vmatprep.subr.bf16.mxu0 %v3900_v6  ;;  %v3636_v20 = vld [vmem:[%s4163_s23 + $0xcc] ss:$16 sps:$4 sm:$0xff]  }
 0xab9   : > { %v1902_v11 = vpack.c.bf16 %v1900_v10, %v1900_v10  ;;  %v3631_v10 = vld [vmem:[%s4163_s23 + $0xc0] ss:$16 sps:$4 sm:$0xff]  }
 0xaba   : > { %3488 = vmatpush3.bf16.msra.mxu0 %v3619_v14  ;;  %v3637_v14 = vld [vmem:[%s4163_s23 + $0xa0] ss:$16 sps:$4 sm:$0xff]  }
 0xabb   : > { %3480 = vmatmul.mubr.msk.bf16.vlgmr.msra.gmra.mxu1 %vm1203_vm5, %v1902_v11  ;;  %3489 = vmatprep.subr.bf16.mxu0 %v3900_v6  ;;  %v3634_v11 = vld [vmem:[%s4163_s23 + $0xc8] ss:$16 sps:$4 sm:$0xff]  }
 0xabc   : > { %2433 = vmatprep.mubr.bf16.mxu1 %v3901_v29  ;;  %2402 = vmatpush1.bf16.msra.mxu1 %v3625_v1  ;;  %v3674_v1 = vld [vmem:[%s4215_s1 + $0xf8] sm:$0xff]  }
 0xabd   : > { %2403 = vmatprep.subr.bf16.mxu1 %v3633_v7  ;;  %v3686_v7 = vld [vmem:[%s4215_s1 + $0xe0] sm:$0xff]  }
 0xabe   : > { %3490 = vmatpush3.bf16.msra.mxu0 %v3620_v18  ;;  %v3640_v18 = vld [vmem:[%s4163_s23 + $0xa8] ss:$16 sps:$4 sm:$0xff]  }
 0xabf   : > { %3491 = vmatprep.subr.bf16.mxu0 %v3900_v6 }
 0xac0   : > { %2404 = vmatpush1.bf16.msra.mxu1 %v3631_v10  ;;  %v3688_v10 = vld [vmem:[%s4215_s1 + $0xa0] sm:$0xff]  }
 0xac1   : > { %2405 = vmatprep.subr.bf16.mxu1 %v3639_v12  ;;  %v3690_v12 = vld [vmem:[%s4215_s1 + $0xd8] sm:$0xff]  }
 0xac2   : > { %3492 = vmatpush3.bf16.msra.mxu0 %v3621_v16  ;;  %v3643_v16 = vld [vmem:[%s4163_s23 + $0x80] ss:$16 sps:$4 sm:$0xff]  }
 0xac3   : > { %3493 = vmatprep.subr.bf16.mxu0 %v3900_v6 }
 0xac4   : > { %2406 = vmatpush1.bf16.msra.mxu1 %v3637_v14  ;;  %v3692_v14 = vld [vmem:[%s4215_s1 + $0x98] sm:$0xff]  }
 0xac6   : > { %3494 = vmatpush3.bf16.msra.mxu0 %v3622_v19  ;;  %v3645_v19 = vld [vmem:[%s4163_s23 + $0x84] ss:$16 sps:$4 sm:$0xff]  }
 0xac7   : > { %3495 = vmatprep.subr.bf16.mxu0 %v3900_v6  ;;  %2407 = vmatprep.subr.bf16.mxu1 %v3645_v19  ;;  %v3695_v19 = vld [vmem:[%s4215_s1 + $0x10] sm:$0xff]  }
 0xac8   : > { %2408 = vmatpush1.bf16.msra.mxu1 %v3643_v16  ;;  %v3694_v16 = vld [vmem:[%s4215_s1 + $0xd0] sm:$0xff]  }
 0xaca   : > { %3496 = vmatpush3.bf16.msra.mxu0 %v3623_v22  ;;  %v3646_v22 = vld [vmem:[%s4163_s23 + $0x88] ss:$16 sps:$4 sm:$0xff]  }
 0xacb   : > { %3497 = vmatprep.subr.bf16.mxu0 %v3900_v6  ;;  %v3578_v6 = vunpack.i.l.bf16 %v3577_v39  ;;  %v3661_v39 = vld [vmem:[%s4163_s23 + $0x20] ss:$16 sps:$4 sm:$0xff]  }
 0xacd   : > { %v2026_v50 = vsel %vm2025_vm6, %v2023_v46, %v3578_v6  ;;  %v3667_v6 = vld [vmem:[%s4163_s23] ss:$16 sps:$4 sm:$0xff]  }
 0xace   : > { %3498 = vmatpush3.bf16.msra.mxu0 %v3624_v24  ;;  %v3651_v24 = vld [vmem:[%s4163_s23 + $0x64] ss:$16 sps:$4 sm:$0xff]  }
 0xacf   : > { %2444 = vmatprep.subr.bf16.mxu0 %v3630_v8  ;;  %2409 = vmatprep.subr.bf16.mxu1 %v3651_v24  ;;  %v3677_v8 = vld [vmem:[%s4215_s1 + $0x70] sm:$0xff]   ;;  %v3698_v24 = vld [vmem:[%s4215_s1 + $0xc8] sm:$0xff]  }
 0xb71   : > { %v1945_v23 = vpop.f32.mrf.mxu0 }
 0xb73   : > { %v3475_v25 = vpop.f32.mrf.mxu0 }
 0xb74   : > { %v3654_v25 = vld [vmem:[%s4163_s23 + $0x6c] ss:$16 sps:$4 sm:$0xff]  }
 0xb75   : > { %v1948_v26 = vpop.f32.mrf.mxu0 }
 0xb76   : > { %v3649_v26 = vld [vmem:[%s4163_s23 + $0x60] ss:$16 sps:$4 sm:$0xff]  }
 0xb77   : > { %v3476_v9 = vpop.f32.mrf.mxu0  ;;  %2410 = vmatpush1.bf16.msra.mxu1 %v3649_v26  ;;  %v3700_v26 = vld [vmem:[%s4215_s1 + $0x88] sm:$0xff]  }
 0xb78   : > { %v3652_v9 = vld [vmem:[%s4163_s23 + $0x68] ss:$16 sps:$4 sm:$0xff]  }
 0xb7b   : > { %v1993_v28 = vpop.f32.mrf.mxu1 }
 0xb7c   : > { %v3580_v30 = vpack.i.bf16 %v1993_v28, %v1945_v23  ;;  %v3648_v23 = vld [vmem:[%s4163_s23 + $0x8c] ss:$16 sps:$4 sm:$0xff]   ;;  %v3657_v28 = vld [vmem:[%s4163_s23 + $0x44] ss:$16 sps:$4 sm:$0xff]  }
 0xb7d   : > { %v3481_v31 = vpop.f32.mrf.mxu1  ;;  %2411 = vmatprep.subr.bf16.mxu1 %v3657_v28  ;;  %v3702_v28 = vld [vmem:[%s4215_s1 + $0xc0] sm:$0xff]  }
 0xb7e   : > { %3581 = vrot.lane.b32.xlu0 %v3580_v30, %s3905_s17  ;;  %v3660_v30 = vld [vmem:[%s4163_s23 + $0x4c] ss:$16 sps:$4 sm:$0xff]   ;;  %v3655_v31 = vld [vmem:[%s4163_s23 + $0x40] ss:$16 sps:$4 sm:$0xff]   ;;  %s4757_s17 = sld [smem:[#allocation20_spill]] (!%p3265_p5) }
 0xb7f   : > { %v1996_v32 = vpop.f32.mrf.mxu1  ;;  %2412 = vmatpush1.bf16.msra.mxu1 %v3655_v31  ;;  %v3704_v31 = vld [vmem:[%s4215_s1 + $0x80] sm:$0xff]  }
 0xb80   : > { %v3658_v32 = vld [vmem:[%s4163_s23 + $0x48] ss:$16 sps:$4 sm:$0xff]  }
 0xb81   : > { %v3482_v33 = vpop.f32.mrf.mxu1 }
 0xb82   : > { %v3663_v33 = vld [vmem:[%s4163_s23 + $0x24] ss:$16 sps:$4 sm:$0xff]  }
 0xb83   : > { %2413 = vmatprep.subr.bf16.mxu1 %v3663_v33  ;;  %v2235_v33 = vsub.s32 3, %v4297_v56 }
 0xb84   : > { %2414 = vmatpush1.bf16.msra.mxu1 %v3661_v39 }
 0xb85   : > { %2415 = vmatprep.subr.bf16.mxu1 %v3669_v42 }
 0xb88   : > { %2416 = vmatpush1.bf16.msra.mxu1 %v3667_v6 }
 0xbf0   : > { %v3582_v44 = vpop.permute.xlu0 %3581 }
 0xbf1   : > { %v3584_v48 = vunpack.i.h.bf16 %v3582_v44  ;;  %v3583_v49 = vunpack.i.l.bf16 %v3582_v44  ;;  %v3670_v44 = vld [vmem:[%s4163_s23 + $0x8] ss:$16 sps:$4 sm:$0xff]  }
 0xbf3   : > { %v2030_v52 = vsel %vm2028_vm7, %v2027_v51, %v3584_v48  ;;  %v2029_v53 = vsel %vm2028_vm7, %v2026_v50, %v3583_v49 }
 0xbf4   : > { %v2031_v54 = vpack.c.bf16 %v2030_v52, %v2029_v53 }
 0xbf6   : > { %3500 = vmatmul.mubr.bf16.vlgmr.msra.gmra.mxu0 %v2031_v54  ;;  %v3198_v54 = vld [vmem:[%s731_s30] ss:$0 sm:$0xff] }
 0xbf7   : > { %2476 = vmatprep.mubr.bf16.mxu0 %v3901_v29  ;;  %2445 = vmatpush1.bf16.msra.mxu0 %v3628_v17  ;;  %v3676_v17 = vld [vmem:[%s4215_s1 + $0xb8] sm:$0xff]  }
 0xbf8   : > { %2446 = vmatprep.subr.bf16.mxu0 %v3636_v20  ;;  %v3687_v20 = vld [vmem:[%s4215_s1 + $0x20] sm:$0xff]  }
 0xbfb   : > { %2447 = vmatpush1.bf16.msra.mxu0 %v3634_v11  ;;  %v3689_v11 = vld [vmem:[%s4215_s1 + $0x58] sm:$0xff]  }
 0xbfc   : > { %2448 = vmatprep.subr.bf16.mxu0 %v3642_v13  ;;  %v3691_v13 = vld [vmem:[%s4215_s1 + $0x18] sm:$0xff]  }
 0xbff   : > { %2449 = vmatpush1.bf16.msra.mxu0 %v3640_v18  ;;  %v3693_v18 = vld [vmem:[%s4215_s1 + $0x50] sm:$0xff]  }
 0xc00   : > { %2450 = vmatprep.subr.bf16.mxu0 %v3648_v23  ;;  %v3697_v23 = vld [vmem:[%s4215_s1 + $0x48] sm:$0xff]  }
 0xc03   : > { %2451 = vmatpush1.bf16.msra.mxu0 %v3646_v22  ;;  %v3696_v22 = vld [vmem:[%s4215_s1 + $0x90] sm:$0xff]  }
 0xc04   : > { %2452 = vmatprep.subr.bf16.mxu0 %v3654_v25  ;;  %v3699_v25 = vld [vmem:[%s4215_s1 + $0x8] sm:$0xff]  }
 0xc07   : > { %2453 = vmatpush1.bf16.msra.mxu0 %v3652_v9  ;;  %v3701_v9 = vld [vmem:[%s4215_s1 + $0x40] sm:$0xff]  }
 0xc08   : > { %2454 = vmatprep.subr.bf16.mxu0 %v3660_v30  ;;  %v3703_v30 = vld [vmem:[%s4215_s1] sm:$0xff]  }
 0xc0b   : > { %2455 = vmatpush1.bf16.msra.mxu0 %v3658_v32  ;;  %v2219_v32 = vld [vmem:[%s4209_s12] sm:$0xf] }
 0xc0c   : > { %2456 = vmatprep.subr.bf16.mxu0 %v3666_v36  ;;  %v2224_v36 = vrot.slane %v2219_v32, %v4305_v63  ;;  %v2232_v39 = vrot.slane %v2219_v32, %v883_v59  ;;  %v2236_v42 = vrot.slane %v2219_v32, %v2235_v33 }
 0xc0f   : > { %2457 = vmatpush1.bf16.msra.mxu0 %v3664_v41  ;;  %v2228_v41 = vrot.slane %v2219_v32, %v879_v57 }
 0xc10   : > { %2458 = vmatprep.subr.bf16.mxu0 %v3672_v43 }
 0xc13   : > { %2459 = vmatpush1.bf16.msra.mxu0 %v3670_v44 }
 0xc14   : > { %3345 = vmatprep.subr.bf16.mxu0 %v3674_v1 }
 0xcb6   : > { %v2137_v34 = vpop.f32.mrf.mxu0 }
 0xcb7   : > { %v2138_v55 = vadd.f32 %v3189_v40, %v2137_v34 }
 0xcb8   : > { %v3501_v37 = vpop.f32.mrf.mxu0 }
 0xcb9   : > { %v4525_v60 = vadd.f32 %v3761_v58, %v2138_v55  ;;  %v3199_v37 = vld [vmem:[%s734_s4] ss:$0 sm:$0xff] }
 0xcba   : > { %v2140_v61 = vpop.f32.mrf.mxu0 }
 0xcbb   : > { %v2141_v47 = vadd.f32 %v3189_v40, %v2140_v61  ;;  %2148 = vadd.xlane.f32.xlu1 %v4525_v60 }
 0xcbc   : > { %v3502_v29 = vpop.f32.mrf.mxu0 }
 0xcbd   : > { %v4531_v0 = vadd.f32 %v3762_v62, %v2141_v47  ;;  %v3673_v62 = vld [vmem:[%s4215_s1 + $0x78] sm:$0xff]  }
 0xcbe   : > { %3323 = vmatprep.subr.bf16.mxu1 %v3673_v62 }
 0xcbf   : > { %2150 = vadd.xlane.f32.xlu0 %v4531_v0 }
 0xd44   : > { %v2149_v27 = vpop.xlane.xlu1 %2148 }
 0xd45   : > { %v2152_v35 = vmul.f32 0.0078125, %v2149_v27  ;;  %v3678_v27 = vld [vmem:[%s4215_s1 + $0xf0] sm:$0xff]  }
 0xd47   : > { %v4539_v38 = vsub.f32 %v4525_v60, %v2152_v35  ;;  %v3679_v35 = vld [vmem:[%s4215_s1 + $0x30] sm:$0xff]  }
 0xd48   : > { %v2151_v15 = vpop.xlane.xlu0 %2150 }
 0xd49   : > { %v2153_v3 = vmul.f32 0.0078125, %v2151_v15  ;;  %v2156_v21 = vmul.f32 %v4539_v38, %v4539_v38  ;;  %v3681_v15 = vld [vmem:[%s4215_s1 + $0x68] sm:$0xff]  }
 0xd4b   : > { %v4544_v4 = vsub.f32 %v4531_v0, %v2153_v3  ;;  %2158 = vadd.xlane.f32.xlu0 %v2156_v21  ;;  %v3682_v3 = vld [vmem:[%s4215_s1 + $0xe8] sm:$0xff]  }
 0xd4c   : > { %v3683_v21 = vld [vmem:[%s4215_s1 + $0x28] sm:$0xff]  }
 0xd4d   : > { %v2157_v5 = vmul.f32 %v4544_v4, %v4544_v4 }
 0xd4f   : > { %2160 = vadd.xlane.f32.xlu0 %v2157_v5  ;;  %v3685_v5 = vld [vmem:[%s4215_s1 + $0x60] sm:$0xff]  }
 0xdd4   : > { %v2159_v45 = vpop.xlane.xlu0 %2158 }
 0xdd5   : > { %v2162_v46 = vmul.f32 0.0078125, %v2159_v45 }
 0xdd7   : > { %v2164_v48 = vadd.f32 1e-05, %v2162_v46 }
 0xdd8   : > { %v2161_v49 = vpop.xlane.xlu0 %2160 }
 0xdd9   : > { %3741 = vrsqrt.f32 %v2164_v48  ;;  %v2163_v50 = vmul.f32 0.0078125, %v2161_v49 }
 0xddb   : > { %v2165_v51 = vadd.f32 1e-05, %v2163_v50 }
 0xddd   : > { %3743 = vrsqrt.f32 %v2165_v51 }
 0xde6   : > { %v3742_v52 = vpop.eup %3741 }
 0xde7   : > { %v2168_v53 = vmul.f32 %v3742_v52, %v4539_v38  ;;  %v3680_v38 = vld [vmem:[%s4215_s1 + $0xb0] sm:$0xff]  }
 0xde9   : > { %v2176_v55 = vmul.f32 %v3198_v54, %v2168_v53 }
 0xdea   : > { %v3744_v40 = vpop.eup %3743 }
 0xdeb   : > { %v2169_v34 = vmul.f32 %v3744_v40, %v4544_v4  ;;  %v2184_v61 = vadd.f32 %v3199_v37, %v2176_v55  ;;  %v3684_v4 = vld [vmem:[%s4215_s1 + $0xa8] sm:$0xff]  }
 0xded   : > { %v2177_v58 = vmul.f32 %v3198_v54, %v2169_v34 }
 0xdef   : > { %v2185_v47 = vadd.f32 %v3199_v37, %v2177_v58 }
 0xdf1   : > { %v2186_v29 = vpack.c.bf16 %v2185_v47, %v2184_v61 }
 0xdf3   : > { %2434 = vmatmul.mubr.bf16.vlgmr.msra.gmra.mxu1 %v2186_v29  ;;  %2477 = vmatmul.mubr.bf16.vlgmr.msra.gmra.mxu0 %v2186_v29 }
 0xdf4   : > { %3324 = vmatpush3.bf16.msra.mxu1 %v3675_v2  ;;  %3346 = vmatpush3.bf16.msra.mxu0 %v3676_v17 }
 0xdf5   : > { %3325 = vmatprep.subr.bf16.mxu1 %v3677_v8  ;;  %3347 = vmatprep.subr.bf16.mxu0 %v3678_v27 }
 0xdf8   : > { %3326 = vmatpush3.bf16.msra.mxu1 %v3679_v35  ;;  %3348 = vmatpush3.bf16.msra.mxu0 %v3680_v38 }
 0xdf9   : > { %3327 = vmatprep.subr.bf16.mxu1 %v3681_v15  ;;  %3349 = vmatprep.subr.bf16.mxu0 %v3682_v3 }
 0xdfc   : > { %3328 = vmatpush3.bf16.msra.mxu1 %v3683_v21  ;;  %3350 = vmatpush3.bf16.msra.mxu0 %v3684_v4 }
 0xdfd   : > { %3329 = vmatprep.subr.bf16.mxu1 %v3685_v5  ;;  %3351 = vmatprep.subr.bf16.mxu0 %v3686_v7 }
 0xe00   : > { %3330 = vmatpush3.bf16.msra.mxu1 %v3687_v20  ;;  %3352 = vmatpush3.bf16.msra.mxu0 %v3688_v10 }
 0xe01   : > { %3331 = vmatprep.subr.bf16.mxu1 %v3689_v11  ;;  %3353 = vmatprep.subr.bf16.mxu0 %v3690_v12 }
 0xe04   : > { %3332 = vmatpush3.bf16.msra.mxu1 %v3691_v13  ;;  %3354 = vmatpush3.bf16.msra.mxu0 %v3692_v14 }
 0xe05   : > { %3333 = vmatprep.subr.bf16.mxu1 %v3693_v18  ;;  %3355 = vmatprep.subr.bf16.mxu0 %v3694_v16 }
 0xe08   : > { %3334 = vmatpush3.bf16.msra.mxu1 %v3695_v19  ;;  %3356 = vmatpush3.bf16.msra.mxu0 %v3696_v22 }
 0xe09   : > { %3335 = vmatprep.subr.bf16.mxu1 %v3697_v23  ;;  %3357 = vmatprep.subr.bf16.mxu0 %v3698_v24 }
 0xe0c   : > { %3336 = vmatpush3.bf16.msra.mxu1 %v3699_v25  ;;  %3358 = vmatpush3.bf16.msra.mxu0 %v3700_v26 }
 0xe0d   : > { %3337 = vmatprep.subr.bf16.mxu1 %v3701_v9  ;;  %3359 = vmatprep.subr.bf16.mxu0 %v3702_v28 }
 0xe10   : > { %3338 = vmatpush3.bf16.msra.mxu1 %v3703_v30  ;;  %3360 = vmatpush3.bf16.msra.mxu0 %v3704_v31 }
 0xeb3   : > { %v2435_v43 = vpop.f32.mrf.mxu1  ;;  %v2478_v6 = vpop.f32.mrf.mxu0 }
 0xeb4   : > { %v4627_v44 = vadd.f32 %v2435_v43, %v2224_v36  ;;  %v4629_v45 = vadd.f32 %v2478_v6, %v2232_v39 }
 0xeb5   : > { %v2437_v46 = vpop.f32.mrf.mxu1  ;;  %v2480_v48 = vpop.f32.mrf.mxu0 }
 0xeb6   : > { %v2495_v49 = vmul.f32 0.044715, %v4627_v44  ;;  %v2497_v50 = vmul.f32 0.044715, %v4629_v45  ;;  %v2438_v63 = vadd.f32 %v2437_v46, %v2228_v41  ;;  %v4633_v51 = vadd.f32 %v2480_v48, %v2236_v42 }
 0xeb7   : > { %v2439_v59 = vpop.f32.mrf.mxu1  ;;  %v2482_v52 = vpop.f32.mrf.mxu0  ;;  %v2487_v46 = vmul.f32 0.5, %v4627_v44 }
 0xeb8   : > { %v2503_v56 = vmul.f32 %v2495_v49, %v4627_v44  ;;  %v2505_v57 = vmul.f32 %v2497_v50, %v4629_v45  ;;  %v2496_v53 = vmul.f32 0.044715, %v2438_v63  ;;  %v2498_v54 = vmul.f32 0.044715, %v4633_v51 }
 0xeb9   : > { %v2440_v40 = vadd.f32 %v2439_v59, %v2224_v36  ;;  %v4638_v34 = vadd.f32 %v2482_v52, %v2232_v39  ;;  %v2441_v55 = vpop.f32.mrf.mxu1  ;;  %v2484_v37 = vpop.f32.mrf.mxu0  ;;  %v2488_v43 = vmul.f32 0.5, %v2438_v63 }
 0xeba   : > { %v2511_v58 = vmul.f32 %v2503_v56, %v4627_v44  ;;  %v2513_v61 = vmul.f32 %v2505_v57, %v4629_v45  ;;  %v2504_v47 = vmul.f32 %v2496_v53, %v2438_v63  ;;  %v2506_v29 = vmul.f32 %v2498_v54, %v4633_v51 }
 0xebb   : > { %v2499_v62 = vmul.f32 0.044715, %v2440_v40  ;;  %v2501_v1 = vmul.f32 0.044715, %v4638_v34  ;;  %v2442_v2 = vadd.f32 %v2441_v55, %v2228_v41  ;;  %v2485_v17 = vadd.f32 %v2484_v37, %v2236_v42 }
 0xebc   : > { %v2519_v8 = vadd.f32 %v2511_v58, %v4627_v44  ;;  %v2521_v27 = vadd.f32 %v2513_v61, %v4629_v45  ;;  %v2512_v35 = vmul.f32 %v2504_v47, %v2438_v63  ;;  %v2514_v38 = vmul.f32 %v2506_v29, %v4633_v51 }
 0xebd   : > { %v2507_v15 = vmul.f32 %v2499_v62, %v2440_v40  ;;  %v2509_v3 = vmul.f32 %v2501_v1, %v4638_v34  ;;  %v2500_v21 = vmul.f32 0.044715, %v2442_v2  ;;  %v2502_v4 = vmul.f32 0.044715, %v2485_v17 }
 0xebe   : > { %v2527_v5 = vmul.f32 0.7978846, %v2519_v8  ;;  %v2529_v7 = vmul.f32 0.7978846, %v2521_v27  ;;  %v2520_v20 = vadd.f32 %v2512_v35, %v2438_v63  ;;  %v2522_v18 = vadd.f32 %v2514_v38, %v4633_v51 }
 0xebf   : > { %v2515_v10 = vmul.f32 %v2507_v15, %v2440_v40  ;;  %v2517_v11 = vmul.f32 %v2509_v3, %v4638_v34  ;;  %v2508_v12 = vmul.f32 %v2500_v21, %v2442_v2  ;;  %v2510_v13 = vmul.f32 %v2502_v4, %v2485_v17 }
 0xec0   : > { %v2528_v14 = vmul.f32 0.7978846, %v2520_v20  ;;  %3745 = vtanh.f32 %v2527_v5  ;;  %v2530_v24 = vmul.f32 0.7978846, %v2522_v18  ;;  %v2491_v59 = vmul.f32 0.5, %v2440_v40 }
 0xec1   : > { %v2523_v16 = vadd.f32 %v2515_v10, %v2440_v40  ;;  %v2525_v19 = vadd.f32 %v2517_v11, %v4638_v34  ;;  %v2516_v22 = vmul.f32 %v2508_v12, %v2442_v2  ;;  %3747 = vtanh.f32 %v2529_v7 }
 0xec2   : > { %v2518_v23 = vmul.f32 %v2510_v13, %v2485_v17  ;;  %3749 = vtanh.f32 %v2528_v14  ;;  %v2492_v53 = vmul.f32 0.5, %v2442_v2  ;;  %v2493_v55 = vmul.f32 0.5, %v4638_v34 }
 0xec3   : > { %v2531_v25 = vmul.f32 0.7978846, %v2523_v16  ;;  %v2533_v26 = vmul.f32 0.7978846, %v2525_v19  ;;  %v2524_v9 = vadd.f32 %v2516_v22, %v2442_v2  ;;  %3751 = vtanh.f32 %v2530_v24 }
 0xec4   : > { %v2526_v28 = vadd.f32 %v2518_v23, %v2485_v17  ;;  %v2490_v58 = vmul.f32 0.5, %v4633_v51  ;;  %v2494_v61 = vmul.f32 0.5, %v2485_v17  ;;  %v2489_v44 = vmul.f32 0.5, %v4629_v45  ;;  %v3232_v45 = vld [vmem:[%s741_s26] ss:$0 sm:$0xff] }
 0xec5   : > { %3753 = vtanh.f32 %v2531_v25  ;;  %v2532_v30 = vmul.f32 0.7978846, %v2524_v9 }
 0xec6   : > { %3755 = vtanh.f32 %v2533_v26  ;;  %v2534_v31 = vmul.f32 0.7978846, %v2526_v28 }
 0xec7   : > { %3757 = vtanh.f32 %v2532_v30 }
 0xec8   : > { %3759 = vtanh.f32 %v2534_v31 }
 0xecd   : > { %v3746_v32 = vpop.eup %3745 }
 0xece   : > { %v3748_v33 = vpop.eup %3747  ;;  %v2543_v52 = vadd.f32 1.0, %v3746_v32 }
 0xecf   : > { %v3750_v36 = vpop.eup %3749  ;;  %v2545_v37 = vadd.f32 1.0, %v3748_v33 }
 0xed0   : > { %v3752_v39 = vpop.eup %3751  ;;  %v2544_v6 = vadd.f32 1.0, %v3750_v36  ;;  %v2551_v27 = vmul.f32 %v2543_v52, %v2487_v46 }
 0xed1   : > { %v2546_v50 = vadd.f32 1.0, %v3752_v39  ;;  %v2553_v2 = vmul.f32 %v2545_v37, %v2489_v44 }
 0xed2   : > { %v3754_v41 = vpop.eup %3753  ;;  %v2552_v29 = vmul.f32 %v2544_v6, %v2488_v43 }
 0xed3   : > { %v3756_v42 = vpop.eup %3755  ;;  %v2547_v48 = vadd.f32 1.0, %v3754_v41  ;;  %v2554_v40 = vmul.f32 %v2546_v50, %v2490_v58 }
 0xed4   : > { %v3758_v49 = vpop.eup %3757  ;;  %v2549_v56 = vadd.f32 1.0, %v3756_v42 }
 0xed5   : > { %v3760_v57 = vpop.eup %3759  ;;  %v2548_v54 = vadd.f32 1.0, %v3758_v49  ;;  %v2555_v63 = vmul.f32 %v2547_v48, %v2491_v59 }
 0xed6   : > { %v2550_v47 = vadd.f32 1.0, %v3760_v57  ;;  %v2557_v1 = vmul.f32 %v2549_v56, %v2493_v55 }
 0xed7   : > { %v2556_v62 = vmul.f32 %v2548_v54, %v2492_v53  ;;  %v2559_v15 = vpack.c.bf16 %v2555_v63, %v2551_v27 }
 0xed8   : > { %v2558_v8 = vmul.f32 %v2550_v47, %v2494_v61  ;;  %v2561_v34 = vpack.c.bf16 %v2557_v1, %v2553_v2 }
 0xed9   : > { %v2560_v35 = vpack.c.bf16 %v2556_v62, %v2552_v29 }
 0xeda   : > { %v2562_v38 = vpack.c.bf16 %v2558_v8, %v2554_v40 }
 0xedb   : > { %2858 = vmatprep.mubr.bf16.mxu1 %v2560_v35 }
 0xedc   : > { %2899 = vmatprep.mubr.bf16.mxu0 %v2562_v38  ;;  %2859 = vmatmul.mubr.bf16.vlgmr.msra.gmra.mxu1 %v2559_v15 }
 0xedd   : > { %2900 = vmatmul.mubr.bf16.vlgmr.msra.gmra.mxu0 %v2561_v34 }
 0xf9c   : > { %v3339_v51 = vpop.f32.mrf.mxu1 }
 0xf9d   : > { %v3361_v17 = vpop.f32.mrf.mxu0 }
 0xf9e   : > { %v3340_v3 = vpop.f32.mrf.mxu1 }
 0xf9f   : > { %v3341_v21 = vadd.f32 %v3340_v3, %v3339_v51  ;;  %v3362_v4 = vpop.f32.mrf.mxu0 }
 0xfa0   : > { %v3342_v5 = vpop.f32.mrf.mxu1  ;;  %v3363_v20 = vadd.f32 %v3362_v4, %v3361_v17 }
 0xfa1   : > { %v2861_v7 = vadd.f32 %v3341_v21, %v3232_v45  ;;  %v3364_v10 = vpop.f32.mrf.mxu0 }
 0xfa2   : > { %v3343_v11 = vpop.f32.mrf.mxu1 }
 0xfa3   : > { %v2902_v12 = vadd.f32 %v3363_v20, %v2861_v7  ;;  %v3344_v13 = vadd.f32 %v3343_v11, %v3342_v5  ;;  %v3365_v14 = vpop.f32.mrf.mxu0 }
 0xfa4   : > { %v3366_v19 = vadd.f32 %v3365_v14, %v3364_v10 }
 0xfa5   : > { %v2908_v18 = vadd.f32 %v2902_v12, %v4525_v60  ;;  %v2864_v16 = vadd.f32 %v3344_v13, %v3232_v45 }
 0xfa7   : > { %2910 = vst [vmem:[%s4751_s29] sm:$0xff] %v2908_v18  ;;  %v2905_v22 = vadd.f32 %v3366_v19, %v2864_v16  ;;  %2915 = sbr.rel (%p3265_p5) target bundleno = 4323 (0x10e3), region = 104 }
 0xfa9   : > { %v2909_v23 = vadd.f32 %v2905_v22, %v4531_v0 }
 0xfab   : > { %2911 = vst [vmem:[%s4751_s29 + $0x8] sm:$0xff] %v2909_v23 }
 0xfac   : > { %2918 = vadd.xlane.f32.xlu0 %v2908_v18  ;;  %v3266_v43 = vld [vmem:[%s4757_s17] ss:$0 sm:$0xff] }
 0xfad   : > { %v3267_v46 = vld [vmem:[%s4758_s11] ss:$0 sm:$0xff] }
 0xfb0   : > { %2920 = vadd.xlane.f32.xlu0 %v2909_v23 }
0x1035   : > { %v2919_v24 = vpop.xlane.xlu0 %2918 }
0x1036   : > { %v2922_v60 = vmul.f32 0.0078125, %v2919_v24 }
0x1038   : > { %v2924_v25 = vsub.f32 %v2908_v18, %v2922_v60 }
0x1039   : > { %v2921_v26 = vpop.xlane.xlu0 %2920 }
0x103a   : > { %v2923_v9 = vmul.f32 0.0078125, %v2921_v26  ;;  %v2926_v28 = vmul.f32 %v2924_v25, %v2924_v25 }
0x103c   : > { %v2925_v30 = vsub.f32 %v2909_v23, %v2923_v9  ;;  %2928 = vadd.xlane.f32.xlu1 %v2926_v28 }
0x103e   : > { %v2927_v31 = vmul.f32 %v2925_v30, %v2925_v30 }
0x1040   : > { %2930 = vadd.xlane.f32.xlu1 %v2927_v31 }
0x10c5   : > { %v2929_v0 = vpop.xlane.xlu1 %2928 }
0x10c6   : > { %v2932_v32 = vmul.f32 0.0078125, %v2929_v0 }
0x10c8   : > { %v2934_v33 = vadd.f32 1e-05, %v2932_v32 }
0x10c9   : > { %v2931_v36 = vpop.xlane.xlu1 %2930 }
0x10ca   : > { %3763 = vrsqrt.f32 %v2934_v33  ;;  %v2933_v39 = vmul.f32 0.0078125, %v2931_v36 }
0x10cc   : > { %v2935_v41 = vadd.f32 1e-05, %v2933_v39 }
0x10ce   : > { %3765 = vrsqrt.f32 %v2935_v41 }
0x10d7   : > { %v3764_v42 = vpop.eup %3763 }
0x10d8   : > { %v2938_v6 = vmul.f32 %v3764_v42, %v2924_v25 }
0x10da   : > { %v2946_v48 = vmul.f32 %v3266_v43, %v2938_v6 }
0x10db   : > { %v3766_v49 = vpop.eup %3765 }
0x10dc   : > { %v2954_v50 = vadd.f32 %v3267_v46, %v2946_v48  ;;  %v2939_v59 = vmul.f32 %v3766_v49, %v2925_v30 }
0x10de   : > { %2956 = vst [vmem:[%s4759_s0] sm:$0xff] %v2954_v50  ;;  %v2947_v52 = vmul.f32 %v3266_v43, %v2939_v59 }
0x10e0   : > { %v2955_v56 = vadd.f32 %v3267_v46, %v2947_v52 }
0x10e2   : > { %2957 = vst [vmem:[%s4759_s0 + $0x8] sm:$0xff] %v2955_v56 }
0x10e3 PF: > { %s4760_s24 = sld [smem:[#allocation10_spill]]  ;;  %s4763_s21 = smov %s3881_s22 }
0x10e4   : > { %s4761_s6 = sld [smem:[#allocation9_spill]] }
0x10e5   : > { %s4762_s23 = sld [smem:[#allocation11_spill]] }
0x10e9   : > { %p29_p6 = scmp.ge.s32.totalorder %s4760_s24, 4  }
0x10ea   : > { %s4764_s22 = smov %s4761_s6 }
0x10eb   :  { %31 = sbr.rel (!%p29_p6) target bundleno = 17 (0x11), region = 179 }
0x10f0   :  { %2969 = vsyncpa [#allocation3], 1 }
0x10f1   :  { %2971 = vsyncpa [#allocation3 + $0x1], 1 }
0x10f2   :  { %2972 = vsyncpa [#allocation5], 1 }
0x10f3   :  { %2974 = vsyncpa [#allocation5 + $0x1], 1 }

</bundles_post_ra>
